<compile_context>
chip_gen: v6e
topology: v6e:2x2x1
jax: 0.10.0
libtpu: 0.0.40
codegen_flags: <defaults>
</compile_context>

<pallas_src>
import functools

import numpy as np
import jax
import jax.numpy as jnp
from jax.experimental import pallas as pl
from jax.experimental.pallas import tpu as pltpu


# ---------------------------------------------------------------------------
# Kernels
# ---------------------------------------------------------------------------

def _pw1_kernel(x_ref, w_ref, b_ref, o_ref, *, relu):
    """Fused 1x1 conv (+ folded BN) (+ ReLU).  x_ref: (Cin, T), w: (Cout, Cin)."""
    y = jnp.dot(w_ref[...], x_ref[...], preferred_element_type=jnp.float32)
    y = y + b_ref[...]
    if relu:
        y = jnp.maximum(y, 0.0)
    o_ref[...] = y.astype(o_ref.dtype)


def _pw2_kernel(x_ref, w1_ref, b1_ref, w2_ref, b2_ref, o_ref, *, final_relu):
    """Fused 1x1 conv -> ReLU -> 1x1 conv (+ optional final ReLU)."""
    h = jnp.dot(w1_ref[...], x_ref[...], preferred_element_type=jnp.float32) + b1_ref[...]
    h = jnp.maximum(h, 0.0)
    y = jnp.dot(w2_ref[...], h, preferred_element_type=jnp.float32) + b2_ref[...]
    if final_relu:
        y = jnp.maximum(y, 0.0)
    o_ref[...] = y.astype(o_ref.dtype)


def _gap_mlp_kernel(x_ref, w1_ref, b1_ref, w2_ref, b2_ref, o_ref, acc_ref, *,
                    hw_total, chunk, num_chunks, needs_mask):
    """AdaptiveAvgPool2d(1) fused with the global_att 2-layer MLP (BN folded).

    Grid = (N, num_chunks); the HW-chunk axis (last) is the reduction axis.
    x_ref: (C2, chunk); acc_ref: (C2, 1) f32 scratch; o_ref: (Cout, 1)."""
    k = pl.program_id(1)

    @pl.when(k == 0)
    def _init():
        acc_ref[...] = jnp.zeros_like(acc_ref)

    x = x_ref[...]
    if needs_mask:
        col = jax.lax.broadcasted_iota(jnp.int32, x.shape, 1) + k * chunk
        x = jnp.where(col < hw_total, x, jnp.zeros_like(x))
    acc_ref[...] += jnp.sum(x, axis=-1, keepdims=True, dtype=jnp.float32)

    @pl.when(k == num_chunks - 1)
    def _finalize():
        mean = acc_ref[...] * (1.0 / hw_total)                      # (C2, 1) f32
        # Broadcast across 128 lanes so the tiny MLP matmuls are lane-dense.
        mean_b = jnp.broadcast_to(mean, (mean.shape[0], 128))
        h = jnp.dot(w1_ref[...], mean_b, preferred_element_type=jnp.float32) + b1_ref[...]
        h = jnp.maximum(h, 0.0)
        g = jnp.dot(w2_ref[...], h, preferred_element_type=jnp.float32) + b2_ref[...]
        o_ref[...] = g[:, :1].astype(o_ref.dtype)


def _gating_kernel(local_ref, glob_ref, re_ref, o_ref):
    """att = sigmoid(local + global); out = re*att + re*(1-att)  (as written in torch)."""
    a = jax.nn.sigmoid(local_ref[...].astype(jnp.float32) + glob_ref[...].astype(jnp.float32))
    re = re_ref[...].astype(jnp.float32)
    y = re * a + re * (1.0 - a)
    o_ref[...] = y.astype(o_ref.dtype)


def _resize_kernel(x_ref, ah_ref, awt_ref, o_ref):
    """Separable bilinear resize, one batch element per grid step.

    x_ref: (C, Hin, Win); ah_ref: (Hout, Hin); awt_ref: (Win, Wout)."""
    ah = ah_ref[...].astype(jnp.float32)
    awt = awt_ref[...].astype(jnp.float32)

    @pl.loop(0, x_ref.shape[0])
    def _per_channel(c):
        xc = x_ref[c].astype(jnp.float32)                              # (Hin, Win)
        t = jnp.dot(ah, xc, preferred_element_type=jnp.float32)        # (Hout, Win)
        o_ref[c] = jnp.dot(t, awt, preferred_element_type=jnp.float32).astype(o_ref.dtype)


# ---------------------------------------------------------------------------
# pallas_call wrappers
# ---------------------------------------------------------------------------

def _lane_tile(hw, lane_tile, max_tile=2048):
    if lane_tile is not None:
        return min(lane_tile, hw)
    return hw if hw <= max_tile else max_tile


def _conv1x1(x3, w, b, *, relu, lane_tile=None):
    """x3: (N, Cin, HW) -> (N, Cout, HW)."""
    n, cin, hw = x3.shape
    cout = w.shape[0]
    t = _lane_tile(hw, lane_tile)
    return pl.pallas_call(
        functools.partial(_pw1_kernel, relu=relu),
        out_shape=jax.ShapeDtypeStruct((n, cout, hw), x3.dtype),
        grid_spec=pltpu.PrefetchScalarGridSpec(
            num_scalar_prefetch=0,
            grid=(n, pl.cdiv(hw, t)),
            in_specs=[
                pl.BlockSpec((None, cin, t), lambda i, j: (i, 0, j)),
                pl.BlockSpec((cout, cin), lambda i, j: (0, 0)),
                pl.BlockSpec((cout, 1), lambda i, j: (0, 0)),
            ],
            out_specs=pl.BlockSpec((None, cout, t), lambda i, j: (i, 0, j)),
        ),
        compiler_params=pltpu.CompilerParams(
            dimension_semantics=("parallel", "parallel")),
    )(x3, w, b.reshape(cout, 1))


def _conv1x1_mlp(x3, w1, b1, w2, b2, *, final_relu=False, lane_tile=None):
    """x3: (N, Cin, HW) -> (N, Cout, HW); conv1x1 -> ReLU -> conv1x1 fused."""
    n, cin, hw = x3.shape
    cmid, cout = w1.shape[0], w2.shape[0]
    t = _lane_tile(hw, lane_tile)
    return pl.pallas_call(
        functools.partial(_pw2_kernel, final_relu=final_relu),
        out_shape=jax.ShapeDtypeStruct((n, cout, hw), x3.dtype),
        grid_spec=pltpu.PrefetchScalarGridSpec(
            num_scalar_prefetch=0,
            grid=(n, pl.cdiv(hw, t)),
            in_specs=[
                pl.BlockSpec((None, cin, t), lambda i, j: (i, 0, j)),
                pl.BlockSpec((cmid, cin), lambda i, j: (0, 0)),
                pl.BlockSpec((cmid, 1), lambda i, j: (0, 0)),
                pl.BlockSpec((cout, cmid), lambda i, j: (0, 0)),
                pl.BlockSpec((cout, 1), lambda i, j: (0, 0)),
            ],
            out_specs=pl.BlockSpec((None, cout, t), lambda i, j: (i, 0, j)),
        ),
        compiler_params=pltpu.CompilerParams(
            dimension_semantics=("parallel", "parallel")),
    )(x3, w1, b1.reshape(cmid, 1), w2, b2.reshape(cout, 1))


def _gap_mlp(x3, w1, b1, w2, b2, *, lane_tile=None):
    """Fused global average pool + 2-layer MLP.  x3: (N, C2, HW) -> (N, Cout, 1)."""
    n, c2, hw = x3.shape
    cmid, cout = w1.shape[0], w2.shape[0]
    t = _lane_tile(hw, lane_tile)
    nk = pl.cdiv(hw, t)
    kernel = functools.partial(_gap_mlp_kernel, hw_total=hw, chunk=t,
                               num_chunks=nk, needs_mask=(hw % t) != 0)
    return pl.pallas_call(
        kernel,
        out_shape=jax.ShapeDtypeStruct((n, cout, 1), x3.dtype),
        grid_spec=pltpu.PrefetchScalarGridSpec(
            num_scalar_prefetch=0,
            grid=(n, nk),                                  # reduction axis last
            in_specs=[
                pl.BlockSpec((None, c2, t), lambda i, k: (i, 0, k)),
                pl.BlockSpec((cmid, c2), lambda i, k: (0, 0)),
                pl.BlockSpec((cmid, 1), lambda i, k: (0, 0)),
                pl.BlockSpec((cout, cmid), lambda i, k: (0, 0)),
                pl.BlockSpec((cout, 1), lambda i, k: (0, 0)),
            ],
            out_specs=pl.BlockSpec((None, cout, 1), lambda i, k: (i, 0, 0)),
            scratch_shapes=[pltpu.VMEM((c2, 1), jnp.float32)],
        ),
        compiler_params=pltpu.CompilerParams(
            dimension_semantics=("parallel", "arbitrary")),
    )(x3, w1, b1.reshape(cmid, 1), w2, b2.reshape(cout, 1))


def _gating(local3, glob3, re3, *, lane_tile=None):
    n, c, hw = re3.shape
    t = _lane_tile(hw, lane_tile)
    return pl.pallas_call(
        _gating_kernel,
        out_shape=jax.ShapeDtypeStruct((n, c, hw), re3.dtype),
        grid_spec=pltpu.PrefetchScalarGridSpec(
            num_scalar_prefetch=0,
            grid=(n, pl.cdiv(hw, t)),
            in_specs=[
                pl.BlockSpec((None, c, t), lambda i, j: (i, 0, j)),
                pl.BlockSpec((None, c, 1), lambda i, j: (i, 0, 0)),
                pl.BlockSpec((None, c, t), lambda i, j: (i, 0, j)),
            ],
            out_specs=pl.BlockSpec((None, c, t), lambda i, j: (i, 0, j)),
        ),
        compiler_params=pltpu.CompilerParams(
            dimension_semantics=("parallel", "parallel")),
    )(local3, glob3, re3)


def _bilinear_matrix(out_size, in_size):
    """(out_size, in_size) interpolation matrix matching
    F.interpolate(mode='bilinear', align_corners=False) along one axis."""
    scale = in_size / out_size
    src = (np.arange(out_size, dtype=np.float64) + 0.5) * scale - 0.5
    src = np.clip(src, 0.0, in_size - 1)
    i0 = np.floor(src).astype(np.int64)
    i1 = np.minimum(i0 + 1, in_size - 1)
    frac = (src - i0).astype(np.float32)
    mat = np.zeros((out_size, in_size), dtype=np.float32)
    rows = np.arange(out_size)
    np.add.at(mat, (rows, i0), 1.0 - frac)
    np.add.at(mat, (rows, i1), frac)
    return mat


def bilinear_resize(x4, out_h, out_w):
    """F.interpolate(mode='bilinear', align_corners=False) via separable matmuls."""
    n, c, h_in, w_in = x4.shape
    ah = jnp.asarray(_bilinear_matrix(out_h, h_in), dtype=x4.dtype)      # (Hout, Hin)
    awt = jnp.asarray(_bilinear_matrix(out_w, w_in).T, dtype=x4.dtype)   # (Win, Wout)
    return pl.pallas_call(
        _resize_kernel,
        out_shape=jax.ShapeDtypeStruct((n, c, out_h, out_w), x4.dtype),
        grid_spec=pltpu.PrefetchScalarGridSpec(
            num_scalar_prefetch=0,
            grid=(n,),
            in_specs=[
                pl.BlockSpec((None, c, h_in, w_in), lambda i: (i, 0, 0, 0)),
                pl.BlockSpec((out_h, h_in), lambda i: (0, 0)),
                pl.BlockSpec((w_in, out_w), lambda i: (0, 0)),
            ],
            out_specs=pl.BlockSpec((None, c, out_h, out_w), lambda i: (i, 0, 0, 0)),
        ),
        compiler_params=pltpu.CompilerParams(dimension_semantics=("parallel",)),
    )(x4, ah, awt)


# ---------------------------------------------------------------------------
# GLF forward (Pallas) and parameter handling
# ---------------------------------------------------------------------------

def _fold_bn(w, b, bn, eps=1e-5):
    """Fold an eval-mode BatchNorm2d into the preceding 1x1 conv."""
    s = bn["gamma"] / jnp.sqrt(bn["var"] + eps)
    return w * s[:, None], (b - bn["mean"]) * s + bn["beta"]


def glf_forward(scene_feature, features, p, *, lane_tile=None):
    """Forward pass of GLF.  scene_feature: (N, Cin, Hs, Ws), features: (N, Cf, Hf, Wf)."""
    n, _, hs, ws = scene_feature.shape
    _, _, hf, wf = features.shape
    c = p["wse2"].shape[0]                                   # out_channels

    if (hs, ws) != (hf, wf):
        # PyTorch's final broadcast (attention at scene resolution vs re-encoded
        # features at feature resolution) also requires matching spatial sizes.
        # TODO(synk): support the 1x1 scene-embedding broadcast case end-to-end.
        raise ValueError("scene_feature and features must share spatial size")

    scene3 = scene_feature.reshape(n, scene_feature.shape[1], hs * ws)
    feat3 = features.reshape(n, features.shape[1], hf * wf)

    # scene_encoder: conv1x1 -> ReLU -> conv1x1                (one fused kernel)
    scene_feat = _conv1x1_mlp(scene3, p["wse1"], p["bse1"], p["wse2"], p["bse2"],
                              final_relu=False, lane_tile=lane_tile)

    # content_encoder: conv1x1 + BN(folded) + ReLU              (one fused kernel)
    wce, bce = _fold_bn(p["wce"], p["bce"], p["bn_ce"])
    content = _conv1x1(feat3, wce, bce, relu=True, lane_tile=lane_tile)
    # F.interpolate to the scene size is the identity here (equal sizes enforced
    # above); see bilinear_resize() for the general bilinear-resize kernel.

    combined = jnp.concatenate([scene_feat, content], axis=1)        # (N, 2C, HW)

    # local_att: conv-BN-ReLU-conv-BN (BNs folded)              (one fused kernel)
    wl1, bl1 = _fold_bn(p["wla1"], p["bla1"], p["bn_la1"])
    wl2, bl2 = _fold_bn(p["wla2"], p["bla2"], p["bn_la2"])
    local = _conv1x1_mlp(combined, wl1, bl1, wl2, bl2, final_relu=False,
                         lane_tile=lane_tile)                         # (N, C, HW)

    # global_att: AdaptiveAvgPool2d(1) + conv-BN-ReLU-conv-BN   (one fused kernel)
    wg1, bg1 = _fold_bn(p["wga1"], p["bga1"], p["bn_ga1"])
    wg2, bg2 = _fold_bn(p["wga2"], p["bga2"], p["bn_ga2"])
    glob = _gap_mlp(combined, wg1, bg1, wg2, bg2, lane_tile=lane_tile)  # (N, C, 1)

    # feature_reencoder: conv1x1 + BN(folded) + ReLU
    wfr, bfr = _fold_bn(p["wfr"], p["bfr"], p["bn_fr"])
    reenc = _conv1x1(feat3, wfr, bfr, relu=True, lane_tile=lane_tile)   # (N, C, HW)

    # sigmoid gating: att = sigmoid(local + glob); out = re*att + re*(1-att)
    out3 = _gating(local, glob, reenc, lane_tile=lane_tile)
    return out3.reshape(n, c, hf, wf)


def init_glf_params(key, in_channels, channel_in, out_channels, r=4):
    inter = out_channels // r
    keys = iter(jax.random.split(key, 64))

    def conv(cin, cout):
        w = 0.1 * jax.random.normal(next(keys), (cout, cin), jnp.float32)
        b = 0.1 * jax.random.normal(next(keys), (cout,), jnp.float32)
        return w, b

    def bn(ch):
        return dict(
            gamma=1.0 + 0.1 * jax.random.normal(next(keys), (ch,), jnp.float32),
            beta=0.1 * jax.random.normal(next(keys), (ch,), jnp.float32),
            mean=0.1 * jax.random.normal(next(keys), (ch,), jnp.float32),
            var=jax.random.uniform(next(keys), (ch,), jnp.float32, minval=0.5, maxval=1.5),
        )

    p = {}
    p["wse1"], p["bse1"] = conv(in_channels, out_channels)
    p["wse2"], p["bse2"] = conv(out_channels, out_channels)
    p["wce"], p["bce"] = conv(channel_in, out_channels); p["bn_ce"] = bn(out_channels)
    p["wfr"], p["bfr"] = conv(channel_in, out_channels); p["bn_fr"] = bn(out_channels)
    p["wla1"], p["bla1"] = conv(2 * out_channels, inter); p["bn_la1"] = bn(inter)
    p["wla2"], p["bla2"] = conv(inter, out_channels); p["bn_la2"] = bn(out_channels)
    p["wga1"], p["bga1"] = conv(2 * out_channels, inter); p["bn_ga1"] = bn(inter)
    p["wga2"], p["bga2"] = conv(inter, out_channels); p["bn_ga2"] = bn(out_channels)
    return p


def glf_forward_ref(scene_feature, features, p, eps=1e-5):
    """Pure-jnp reference mirroring the PyTorch module (eval-mode BatchNorm)."""
    def conv(x, w, b):
        return jnp.einsum("oc,nchw->nohw", w, x) + b[None, :, None, None]

    def bn(x, d):
        inv = 1.0 / jnp.sqrt(d["var"] + eps)
        return ((x - d["mean"][None, :, None, None]) * (d["gamma"] * inv)[None, :, None, None]
                + d["beta"][None, :, None, None])

    relu = lambda v: jnp.maximum(v, 0.0)

    sf = conv(relu(conv(scene_feature, p["wse1"], p["bse1"])), p["wse2"], p["bse2"])
    cf = relu(bn(conv(features, p["wce"], p["bce"]), p["bn_ce"]))
    hs, ws = sf.shape[2], sf.shape[3]
    ah = jnp.asarray(_bilinear_matrix(hs, cf.shape[2]))
    aw = jnp.asarray(_bilinear_matrix(ws, cf.shape[3]))
    cf = jnp.einsum("hH,ncHW,wW->nchw", ah, cf, aw)          # identity for equal sizes
    comb = jnp.concatenate([sf, cf], axis=1)
    loc = bn(conv(relu(bn(conv(comb, p["wla1"], p["bla1"]), p["bn_la1"])),
                  p["wla2"], p["bla2"]), p["bn_la2"])
    g = jnp.mean(comb, axis=(2, 3), keepdims=True)
    g = bn(conv(relu(bn(conv(g, p["wga1"], p["bga1"]), p["bn_ga1"])),
                p["wga2"], p["bga2"]), p["bn_ga2"])
    att = jax.nn.sigmoid(loc + g)
    re = relu(bn(conv(features, p["wfr"], p["bfr"]), p["bn_fr"]))
    return re * att + re * (1.0 - att)


if __name__ == "__main__":
    key = jax.random.PRNGKey(0)
    kp, ks1, kf1, ks2, kf2, kr = jax.random.split(key, 6)

    # in_channels=4, channel_in=4, out_channels=32, r=4 (inter_channels=8)
    params = init_glf_params(kp, in_channels=4, channel_in=4, out_channels=32, r=4)

    run = jax.jit(glf_forward, static_argnames=("lane_tile",))

    # Tolerances account for the MXU's default (bf16-pass) precision on f32 matmuls
    # and for BN being folded in the kernel path but applied explicitly in the ref.

    # 1) Main case: batch=2, 4 input channels, 16x16 spatial.
    scene = jax.random.normal(ks1, (2, 4, 16, 16), jnp.float32)
    feats = jax.random.normal(kf1, (2, 4, 16, 16), jnp.float32)
    y = run(scene, feats, params)
    jax.block_until_ready(y)
    y_ref = glf_forward_ref(scene, feats, params)
    assert y.shape == (2, 32, 16, 16)
    assert jnp.allclose(y, y_ref, atol=2e-2, rtol=2e-2), float(jnp.max(jnp.abs(y - y_ref)))

    # 2) Non-128-multiple spatial (20x20 -> HW=400) with forced 128-lane tiling:
    #    exercises multi-chunk pipelining, partial tail blocks and the masked GAP tail.
    scene2 = jax.random.normal(ks2, (2, 4, 20, 20), jnp.float32)
    feats2 = jax.random.normal(kf2, (2, 4, 20, 20), jnp.float32)
    y2 = run(scene2, feats2, params, lane_tile=128)
    jax.block_until_ready(y2)
    y2_ref = glf_forward_ref(scene2, feats2, params)
    assert jnp.allclose(y2, y2_ref, atol=2e-2, rtol=2e-2), float(jnp.max(jnp.abs(y2 - y2_ref)))

    # 3) Standalone bilinear-resize kernel (the module's F.interpolate op) on a
    #    non-trivial up-sample, checked against a dense einsum with the same weights.
    xr = jax.random.normal(kr, (2, 32, 6, 10), jnp.float32)
    yr = bilinear_resize(xr, 12, 16)
    jax.block_until_ready(yr)
    ah = jnp.asarray(_bilinear_matrix(12, 6))
    aw = jnp.asarray(_bilinear_matrix(16, 10))
    yr_ref = jnp.einsum("hH,ncHW,wW->nchw", ah, xr, aw)
    assert yr.shape == (2, 32, 12, 16)
    assert jnp.allclose(yr, yr_ref, atol=1e-2, rtol=1e-2), float(jnp.max(jnp.abs(yr - yr_ref)))

    print("KERNEL_OK")
</pallas_src>

<mosaic_0001>
module attributes {stable_mosaic.version = 11 : i64} {
  func.func @_pw1_kernel(%arg0: i32, %arg1: i32, %arg2: memref<1x4x256xf32, #tpu.memory_space<vmem>>, %arg3: memref<32x4xf32, #tpu.memory_space<vmem>>, %arg4: memref<32x1xf32, #tpu.memory_space<vmem>>, %arg5: memref<1x32x256xf32, #tpu.memory_space<vmem>>) attributes {dimension_semantics = [#tpu.dimension_semantics<parallel>, #tpu.dimension_semantics<parallel>], iteration_bounds = array<i64: 2, 1>, scalar_prefetch = 0 : i64, scratch_operands = 0 : i64, tpu.core_type = #tpu.core_type<tc>, window_params = [{transform_indices = @transform_0, window_bounds = array<i64: 1, 4, 256>}, {pipeline_mode = #tpu.pipeline_mode<synchronous>, transform_indices = @transform_1, window_bounds = array<i64: 32, 4>}, {pipeline_mode = #tpu.pipeline_mode<synchronous>, transform_indices = @transform_2, window_bounds = array<i64: 32, 1>}, {transform_indices = @transform_3, window_bounds = array<i64: 1, 32, 256>}]} {
    %c0 = arith.constant 0 : index
    %c0_0 = arith.constant 0 : index
    %0 = vector.load %arg3[%c0, %c0_0] : memref<32x4xf32, #tpu.memory_space<vmem>>, vector<32x4xf32>
    %c0_1 = arith.constant 0 : index
    %c0_2 = arith.constant 0 : index
    %c0_3 = arith.constant 0 : index
    %1 = vector.load %arg2[%c0_1, %c0_2, %c0_3] : memref<1x4x256xf32, #tpu.memory_space<vmem>>, vector<1x4x256xf32>
    %2 = vector.shape_cast %1 : vector<1x4x256xf32> to vector<4x256xf32>
    %cst = arith.constant dense<0.000000e+00> : vector<32x256xf32>
    %3 = tpu.matmul %0, %2, %cst {dimension_numbers = #tpu.dot_dimension_numbers<[1], [0], [0], [1], [0, 0, 1, 1], [], []>} : vector<32x4xf32>, vector<4x256xf32>, vector<32x256xf32> -> vector<32x256xf32>
    %c0_4 = arith.constant 0 : index
    %c0_5 = arith.constant 0 : index
    %4 = vector.load %arg4[%c0_4, %c0_5] : memref<32x1xf32, #tpu.memory_space<vmem>>, vector<32x1xf32>
    %5 = vector.broadcast %4 : vector<32x1xf32> to vector<32x256xf32>
    %6 = arith.addf %3, %5 : vector<32x256xf32>
    %cst_6 = arith.constant 0.000000e+00 : f32
    %7 = vector.broadcast %cst_6 : f32 to vector<32x256xf32>
    %8 = arith.maximumf %6, %7 : vector<32x256xf32>
    %c0_7 = arith.constant 0 : index
    %c0_8 = arith.constant 0 : index
    %c0_9 = arith.constant 0 : index
    %9 = vector.load %arg5[%c0_7, %c0_8, %c0_9] : memref<1x32x256xf32, #tpu.memory_space<vmem>>, vector<1x32x256xf32>
    %10 = vector.shape_cast %9 : vector<1x32x256xf32> to vector<32x256xf32>
    %11 = vector.shape_cast %8 : vector<32x256xf32> to vector<1x32x256xf32>
    tpu.vector_store %arg5[%c0_7, %c0_8, %c0_9], %11 {strides = array<i32>} : memref<1x32x256xf32, #tpu.memory_space<vmem>>, vector<1x32x256xf32>,
    return
  }
  func.func @transform_0(%arg0: i32, %arg1: i32) -> (i32, i32, i32) {
    %c0_i32 = arith.constant 0 : i32
    %c0_i32_0 = arith.constant 0 : i32
    return %arg0, %c0_i32, %arg1 : i32, i32, i32
  }
  func.func @transform_1(%arg0: i32, %arg1: i32) -> (i32, i32) {
    %c0_i32 = arith.constant 0 : i32
    %c0_i32_0 = arith.constant 0 : i32
    %c0_i32_1 = arith.constant 0 : i32
    return %c0_i32, %c0_i32_0 : i32, i32
  }
  func.func @transform_2(%arg0: i32, %arg1: i32) -> (i32, i32) {
    %c0_i32 = arith.constant 0 : i32
    %c0_i32_0 = arith.constant 0 : i32
    %c0_i32_1 = arith.constant 0 : i32
    return %c0_i32, %c0_i32_0 : i32, i32
  }
  func.func @transform_3(%arg0: i32, %arg1: i32) -> (i32, i32, i32) {
    %c0_i32 = arith.constant 0 : i32
    %c0_i32_0 = arith.constant 0 : i32
    return %arg0, %c0_i32, %arg1 : i32, i32, i32
  }
}

module attributes {stable_mosaic.version = 11 : i64} {
  func.func @_pw2_kernel(%arg0: i32, %arg1: i32, %arg2: memref<1x4x256xf32, #tpu.memory_space<vmem>>, %arg3: memref<32x4xf32, #tpu.memory_space<vmem>>, %arg4: memref<32x1xf32, #tpu.memory_space<vmem>>, %arg5: memref<32x32xf32, #tpu.memory_space<vmem>>, %arg6: memref<32x1xf32, #tpu.memory_space<vmem>>, %arg7: memref<1x32x256xf32, #tpu.memory_space<vmem>>) attributes {dimension_semantics = [#tpu.dimension_semantics<parallel>, #tpu.dimension_semantics<parallel>], iteration_bounds = array<i64: 2, 1>, scalar_prefetch = 0 : i64, scratch_operands = 0 : i64, tpu.core_type = #tpu.core_type<tc>, window_params = [{transform_indices = @transform_0, window_bounds = array<i64: 1, 4, 256>}, {pipeline_mode = #tpu.pipeline_mode<synchronous>, transform_indices = @transform_1, window_bounds = array<i64: 32, 4>}, {pipeline_mode = #tpu.pipeline_mode<synchronous>, transform_indices = @transform_2, window_bounds = array<i64: 32, 1>}, {pipeline_mode = #tpu.pipeline_mode<synchronous>, transform_indices = @transform_3, window_bounds = array<i64: 32, 32>}, {pipeline_mode = #tpu.pipeline_mode<synchronous>, transform_indices = @transform_4, window_bounds = array<i64: 32, 1>}, {transform_indices = @transform_5, window_bounds = array<i64: 1, 32, 256>}]} {
    %c0 = arith.constant 0 : index
    %c0_0 = arith.constant 0 : index
    %0 = vector.load %arg3[%c0, %c0_0] : memref<32x4xf32, #tpu.memory_space<vmem>>, vector<32x4xf32>
    %c0_1 = arith.constant 0 : index
    %c0_2 = arith.constant 0 : index
    %c0_3 = arith.constant 0 : index
    %1 = vector.load %arg2[%c0_1, %c0_2, %c0_3] : memref<1x4x256xf32, #tpu.memory_space<vmem>>, vector<1x4x256xf32>
    %2 = vector.shape_cast %1 : vector<1x4x256xf32> to vector<4x256xf32>
    %cst = arith.constant dense<0.000000e+00> : vector<32x256xf32>
    %3 = tpu.matmul %0, %2, %cst {dimension_numbers = #tpu.dot_dimension_numbers<[1], [0], [0], [1], [0, 0, 1, 1], [], []>} : vector<32x4xf32>, vector<4x256xf32>, vector<32x256xf32> -> vector<32x256xf32>
    %c0_4 = arith.constant 0 : index
    %c0_5 = arith.constant 0 : index
    %4 = vector.load %arg4[%c0_4, %c0_5] : memref<32x1xf32, #tpu.memory_space<vmem>>, vector<32x1xf32>
    %5 = vector.broadcast %4 : vector<32x1xf32> to vector<32x256xf32>
    %6 = arith.addf %3, %5 : vector<32x256xf32>
    %cst_6 = arith.constant 0.000000e+00 : f32
    %7 = vector.broadcast %cst_6 : f32 to vector<32x256xf32>
    %8 = arith.maximumf %6, %7 : vector<32x256xf32>
    %c0_7 = arith.constant 0 : index
    %c0_8 = arith.constant 0 : index
    %9 = vector.load %arg5[%c0_7, %c0_8] : memref<32x32xf32, #tpu.memory_space<vmem>>, vector<32x32xf32>
    %cst_9 = arith.constant dense<0.000000e+00> : vector<32x256xf32>
    %10 = tpu.matmul %9, %8, %cst_9 {dimension_numbers = #tpu.dot_dimension_numbers<[1], [0], [0], [1], [0, 0, 1, 1], [], []>} : vector<32x32xf32>, vector<32x256xf32>, vector<32x256xf32> -> vector<32x256xf32>
    %c0_10 = arith.constant 0 : index
    %c0_11 = arith.constant 0 : index
    %11 = vector.load %arg6[%c0_10, %c0_11] : memref<32x1xf32, #tpu.memory_space<vmem>>, vector<32x1xf32>
    %12 = vector.broadcast %11 : vector<32x1xf32> to vector<32x256xf32>
    %13 = arith.addf %10, %12 : vector<32x256xf32>
    %c0_12 = arith.constant 0 : index
    %c0_13 = arith.constant 0 : index
    %c0_14 = arith.constant 0 : index
    %14 = vector.load %arg7[%c0_12, %c0_13, %c0_14] : memref<1x32x256xf32, #tpu.memory_space<vmem>>, vector<1x32x256xf32>
    %15 = vector.shape_cast %14 : vector<1x32x256xf32> to vector<32x256xf32>
    %16 = vector.shape_cast %13 : vector<32x256xf32> to vector<1x32x256xf32>
    tpu.vector_store %arg7[%c0_12, %c0_13, %c0_14], %16 {strides = array<i32>} : memref<1x32x256xf32, #tpu.memory_space<vmem>>, vector<1x32x256xf32>,
    return
  }
  func.func @transform_0(%arg0: i32, %arg1: i32) -> (i32, i32, i32) {
    %c0_i32 = arith.constant 0 : i32
    %c0_i32_0 = arith.constant 0 : i32
    return %arg0, %c0_i32, %arg1 : i32, i32, i32
  }
  func.func @transform_1(%arg0: i32, %arg1: i32) -> (i32, i32) {
    %c0_i32 = arith.constant 0 : i32
    %c0_i32_0 = arith.constant 0 : i32
    %c0_i32_1 = arith.constant 0 : i32
    return %c0_i32, %c0_i32_0 : i32, i32
  }
  func.func @transform_2(%arg0: i32, %arg1: i32) -> (i32, i32) {
    %c0_i32 = arith.constant 0 : i32
    %c0_i32_0 = arith.constant 0 : i32
    %c0_i32_1 = arith.constant 0 : i32
    return %c0_i32, %c0_i32_0 : i32, i32
  }
  func.func @transform_3(%arg0: i32, %arg1: i32) -> (i32, i32) {
    %c0_i32 = arith.constant 0 : i32
    %c0_i32_0 = arith.constant 0 : i32
    %c0_i32_1 = arith.constant 0 : i32
    return %c0_i32, %c0_i32_0 : i32, i32
  }
  func.func @transform_4(%arg0: i32, %arg1: i32) -> (i32, i32) {
    %c0_i32 = arith.constant 0 : i32
    %c0_i32_0 = arith.constant 0 : i32
    %c0_i32_1 = arith.constant 0 : i32
    return %c0_i32, %c0_i32_0 : i32, i32
  }
  func.func @transform_5(%arg0: i32, %arg1: i32) -> (i32, i32, i32) {
    %c0_i32 = arith.constant 0 : i32
    %c0_i32_0 = arith.constant 0 : i32
    return %arg0, %c0_i32, %arg1 : i32, i32, i32
  }
}

module attributes {stable_mosaic.version = 11 : i64} {
  func.func @_pw2_kernel(%arg0: i32, %arg1: i32, %arg2: memref<1x64x256xf32, #tpu.memory_space<vmem>>, %arg3: memref<8x64xf32, #tpu.memory_space<vmem>>, %arg4: memref<8x1xf32, #tpu.memory_space<vmem>>, %arg5: memref<32x8xf32, #tpu.memory_space<vmem>>, %arg6: memref<32x1xf32, #tpu.memory_space<vmem>>, %arg7: memref<1x32x256xf32, #tpu.memory_space<vmem>>) attributes {dimension_semantics = [#tpu.dimension_semantics<parallel>, #tpu.dimension_semantics<parallel>], iteration_bounds = array<i64: 2, 1>, scalar_prefetch = 0 : i64, scratch_operands = 0 : i64, tpu.core_type = #tpu.core_type<tc>, window_params = [{transform_indices = @transform_0, window_bounds = array<i64: 1, 64, 256>}, {pipeline_mode = #tpu.pipeline_mode<synchronous>, transform_indices = @transform_1, window_bounds = array<i64: 8, 64>}, {pipeline_mode = #tpu.pipeline_mode<synchronous>, transform_indices = @transform_2, window_bounds = array<i64: 8, 1>}, {pipeline_mode = #tpu.pipeline_mode<synchronous>, transform_indices = @transform_3, window_bounds = array<i64: 32, 8>}, {pipeline_mode = #tpu.pipeline_mode<synchronous>, transform_indices = @transform_4, window_bounds = array<i64: 32, 1>}, {transform_indices = @transform_5, window_bounds = array<i64: 1, 32, 256>}]} {
    %c0 = arith.constant 0 : index
    %c0_0 = arith.constant 0 : index
    %0 = vector.load %arg3[%c0, %c0_0] : memref<8x64xf32, #tpu.memory_space<vmem>>, vector<8x64xf32>
    %c0_1 = arith.constant 0 : index
    %c0_2 = arith.constant 0 : index
    %c0_3 = arith.constant 0 : index
    %1 = vector.load %arg2[%c0_1, %c0_2, %c0_3] : memref<1x64x256xf32, #tpu.memory_space<vmem>>, vector<1x64x256xf32>
    %2 = vector.shape_cast %1 : vector<1x64x256xf32> to vector<64x256xf32>
    %cst = arith.constant dense<0.000000e+00> : vector<8x256xf32>
    %3 = tpu.matmul %0, %2, %cst {dimension_numbers = #tpu.dot_dimension_numbers<[1], [0], [0], [1], [0, 0, 1, 1], [], []>} : vector<8x64xf32>, vector<64x256xf32>, vector<8x256xf32> -> vector<8x256xf32>
    %c0_4 = arith.constant 0 : index
    %c0_5 = arith.constant 0 : index
    %4 = vector.load %arg4[%c0_4, %c0_5] : memref<8x1xf32, #tpu.memory_space<vmem>>, vector<8x1xf32>
    %5 = vector.broadcast %4 : vector<8x1xf32> to vector<8x256xf32>
    %6 = arith.addf %3, %5 : vector<8x256xf32>
    %cst_6 = arith.constant 0.000000e+00 : f32
    %7 = vector.broadcast %cst_6 : f32 to vector<8x256xf32>
    %8 = arith.maximumf %6, %7 : vector<8x256xf32>
    %c0_7 = arith.constant 0 : index
    %c0_8 = arith.constant 0 : index
    %9 = vector.load %arg5[%c0_7, %c0_8] : memref<32x8xf32, #tpu.memory_space<vmem>>, vector<32x8xf32>
    %cst_9 = arith.constant dense<0.000000e+00> : vector<32x256xf32>
    %10 = tpu.matmul %9, %8, %cst_9 {dimension_numbers = #tpu.dot_dimension_numbers<[1], [0], [0], [1], [0, 0, 1, 1], [], []>} : vector<32x8xf32>, vector<8x256xf32>, vector<32x256xf32> -> vector<32x256xf32>
    %c0_10 = arith.constant 0 : index
    %c0_11 = arith.constant 0 : index
    %11 = vector.load %arg6[%c0_10, %c0_11] : memref<32x1xf32, #tpu.memory_space<vmem>>, vector<32x1xf32>
    %12 = vector.broadcast %11 : vector<32x1xf32> to vector<32x256xf32>
    %13 = arith.addf %10, %12 : vector<32x256xf32>
    %c0_12 = arith.constant 0 : index
    %c0_13 = arith.constant 0 : index
    %c0_14 = arith.constant 0 : index
    %14 = vector.load %arg7[%c0_12, %c0_13, %c0_14] : memref<1x32x256xf32, #tpu.memory_space<vmem>>, vector<1x32x256xf32>
    %15 = vector.shape_cast %14 : vector<1x32x256xf32> to vector<32x256xf32>
    %16 = vector.shape_cast %13 : vector<32x256xf32> to vector<1x32x256xf32>
    tpu.vector_store %arg7[%c0_12, %c0_13, %c0_14], %16 {strides = array<i32>} : memref<1x32x256xf32, #tpu.memory_space<vmem>>, vector<1x32x256xf32>,
    return
  }
  func.func @transform_0(%arg0: i32, %arg1: i32) -> (i32, i32, i32) {
    %c0_i32 = arith.constant 0 : i32
    %c0_i32_0 = arith.constant 0 : i32
    return %arg0, %c0_i32, %arg1 : i32, i32, i32
  }
  func.func @transform_1(%arg0: i32, %arg1: i32) -> (i32, i32) {
    %c0_i32 = arith.constant 0 : i32
    %c0_i32_0 = arith.constant 0 : i32
    %c0_i32_1 = arith.constant 0 : i32
    return %c0_i32, %c0_i32_0 : i32, i32
  }
  func.func @transform_2(%arg0: i32, %arg1: i32) -> (i32, i32) {
    %c0_i32 = arith.constant 0 : i32
    %c0_i32_0 = arith.constant 0 : i32
    %c0_i32_1 = arith.constant 0 : i32
    return %c0_i32, %c0_i32_0 : i32, i32
  }
  func.func @transform_3(%arg0: i32, %arg1: i32) -> (i32, i32) {
    %c0_i32 = arith.constant 0 : i32
    %c0_i32_0 = arith.constant 0 : i32
    %c0_i32_1 = arith.constant 0 : i32
    return %c0_i32, %c0_i32_0 : i32, i32
  }
  func.func @transform_4(%arg0: i32, %arg1: i32) -> (i32, i32) {
    %c0_i32 = arith.constant 0 : i32
    %c0_i32_0 = arith.constant 0 : i32
    %c0_i32_1 = arith.constant 0 : i32
    return %c0_i32, %c0_i32_0 : i32, i32
  }
  func.func @transform_5(%arg0: i32, %arg1: i32) -> (i32, i32, i32) {
    %c0_i32 = arith.constant 0 : i32
    %c0_i32_0 = arith.constant 0 : i32
    return %arg0, %c0_i32, %arg1 : i32, i32, i32
  }
}

module attributes {stable_mosaic.version = 11 : i64} {
  func.func @_gap_mlp_kernel(%arg0: i32, %arg1: i32, %arg2: memref<1x64x256xf32, #tpu.memory_space<vmem>>, %arg3: memref<8x64xf32, #tpu.memory_space<vmem>>, %arg4: memref<8x1xf32, #tpu.memory_space<vmem>>, %arg5: memref<32x8xf32, #tpu.memory_space<vmem>>, %arg6: memref<32x1xf32, #tpu.memory_space<vmem>>, %arg7: memref<1x32x1xf32, #tpu.memory_space<vmem>>, %arg8: memref<64x1xf32, #tpu.memory_space<vmem>>) attributes {dimension_semantics = [#tpu.dimension_semantics<parallel>, #tpu.dimension_semantics<arbitrary>], iteration_bounds = array<i64: 2, 1>, scalar_prefetch = 0 : i64, scratch_operands = 1 : i64, tpu.core_type = #tpu.core_type<tc>, window_params = [{transform_indices = @transform_0, window_bounds = array<i64: 1, 64, 256>}, {pipeline_mode = #tpu.pipeline_mode<synchronous>, transform_indices = @transform_1, window_bounds = array<i64: 8, 64>}, {pipeline_mode = #tpu.pipeline_mode<synchronous>, transform_indices = @transform_2, window_bounds = array<i64: 8, 1>}, {pipeline_mode = #tpu.pipeline_mode<synchronous>, transform_indices = @transform_3, window_bounds = array<i64: 32, 8>}, {pipeline_mode = #tpu.pipeline_mode<synchronous>, transform_indices = @transform_4, window_bounds = array<i64: 32, 1>}, {transform_indices = @transform_5, window_bounds = array<i64: 1, 32, 1>}]} {
    %c0_i32 = arith.constant 0 : i32
    %0 = arith.cmpi eq, %arg1, %c0_i32 : i32
    %1 = arith.extui %0 : i1 to i32
    %c0_i32_0 = arith.constant 0 : i32
    %2 = arith.cmpi ne, %1, %c0_i32_0 : i32
    scf.if %2 {
      %cst_9 = arith.constant 0.000000e+00 : f32
      %13 = vector.broadcast %cst_9 : f32 to vector<64x1xf32>
      %c0_10 = arith.constant 0 : index
      %c0_11 = arith.constant 0 : index
      %14 = vector.load %arg8[%c0_10, %c0_11] : memref<64x1xf32, #tpu.memory_space<vmem>>, vector<64x1xf32>
      tpu.vector_store %arg8[%c0_10, %c0_11], %13 {strides = array<i32>} : memref<64x1xf32, #tpu.memory_space<vmem>>, vector<64x1xf32>,
    } else {
    }
    %c0 = arith.constant 0 : index
    %c0_1 = arith.constant 0 : index
    %c0_2 = arith.constant 0 : index
    %3 = vector.load %arg2[%c0, %c0_1, %c0_2] : memref<1x64x256xf32, #tpu.memory_space<vmem>>, vector<1x64x256xf32>
    %4 = vector.shape_cast %3 : vector<1x64x256xf32> to vector<64x256xf32>
    %c0_3 = arith.constant 0 : index
    %c0_4 = arith.constant 0 : index
    %5 = vector.load %arg8[%c0_3, %c0_4] : memref<64x1xf32, #tpu.memory_space<vmem>>, vector<64x1xf32>
    %cst = arith.constant dense<0.000000e+00> : vector<64xf32>
    %6 = vector.multi_reduction <add>, %4, %cst [1] : vector<64x256xf32> to vector<64xf32>
    %7 = vector.shape_cast %6 : vector<64xf32> to vector<64x1xf32>
    %8 = arith.addf %5, %7 : vector<64x1xf32>
    %c0_5 = arith.constant 0 : index
    %c0_6 = arith.constant 0 : index
    %9 = vector.load %arg8[%c0_5, %c0_6] : memref<64x1xf32, #tpu.memory_space<vmem>>, vector<64x1xf32>
    tpu.vector_store %arg8[%c0_5, %c0_6], %8 {strides = array<i32>} : memref<64x1xf32, #tpu.memory_space<vmem>>, vector<64x1xf32>,
    %c0_i32_7 = arith.constant 0 : i32
    %10 = arith.cmpi eq, %arg1, %c0_i32_7 : i32
    %11 = arith.extui %10 : i1 to i32
    %c0_i32_8 = arith.constant 0 : i32
    %12 = arith.cmpi ne, %11, %c0_i32_8 : i32
    scf.if %12 {
      %c0_9 = arith.constant 0 : index
      %c0_10 = arith.constant 0 : index
      %13 = vector.load %arg8[%c0_9, %c0_10] : memref<64x1xf32, #tpu.memory_space<vmem>>, vector<64x1xf32>
      %cst_11 = arith.constant 3.906250e-03 : f32
      %14 = vector.broadcast %cst_11 : f32 to vector<64x1xf32>
      %15 = arith.mulf %13, %14 : vector<64x1xf32>
      %16 = vector.shape_cast %15 : vector<64x1xf32> to vector<64x1xf32>
      %17 = vector.broadcast %16 : vector<64x1xf32> to vector<64x128xf32>
      %c0_12 = arith.constant 0 : index
      %c0_13 = arith.constant 0 : index
      %18 = vector.load %arg3[%c0_12, %c0_13] : memref<8x64xf32, #tpu.memory_space<vmem>>, vector<8x64xf32>
      %cst_14 = arith.constant dense<0.000000e+00> : vector<8x128xf32>
      %19 = tpu.matmul %18, %17, %cst_14 {dimension_numbers = #tpu.dot_dimension_numbers<[1], [0], [0], [1], [0, 0, 1, 1], [], []>} : vector<8x64xf32>, vector<64x128xf32>, vector<8x128xf32> -> vector<8x128xf32>
      %c0_15 = arith.constant 0 : index
      %c0_16 = arith.constant 0 : index
      %20 = vector.load %arg4[%c0_15, %c0_16] : memref<8x1xf32, #tpu.memory_space<vmem>>, vector<8x1xf32>
      %21 = vector.broadcast %20 : vector<8x1xf32> to vector<8x128xf32>
      %22 = arith.addf %19, %21 : vector<8x128xf32>
      %cst_17 = arith.constant 0.000000e+00 : f32
      %23 = vector.broadcast %cst_17 : f32 to vector<8x128xf32>
      %24 = arith.maximumf %22, %23 : vector<8x128xf32>
      %c0_18 = arith.constant 0 : index
      %c0_19 = arith.constant 0 : index
      %25 = vector.load %arg5[%c0_18, %c0_19] : memref<32x8xf32, #tpu.memory_space<vmem>>, vector<32x8xf32>
      %cst_20 = arith.constant dense<0.000000e+00> : vector<32x128xf32>
      %26 = tpu.matmul %25, %24, %cst_20 {dimension_numbers = #tpu.dot_dimension_numbers<[1], [0], [0], [1], [0, 0, 1, 1], [], []>} : vector<32x8xf32>, vector<8x128xf32>, vector<32x128xf32> -> vector<32x128xf32>
      %c0_21 = arith.constant 0 : index
      %c0_22 = arith.constant 0 : index
      %27 = vector.load %arg6[%c0_21, %c0_22] : memref<32x1xf32, #tpu.memory_space<vmem>>, vector<32x1xf32>
      %28 = vector.broadcast %27 : vector<32x1xf32> to vector<32x128xf32>
      %29 = arith.addf %26, %28 : vector<32x128xf32>
      %30 = vector.extract_strided_slice %29 {offsets = [0, 0], sizes = [32, 1], strides = [1, 1]} : vector<32x128xf32> to vector<32x1xf32>
      %c0_23 = arith.constant 0 : index
      %c0_24 = arith.constant 0 : index
      %c0_25 = arith.constant 0 : index
      %31 = vector.load %arg7[%c0_23, %c0_24, %c0_25] : memref<1x32x1xf32, #tpu.memory_space<vmem>>, vector<1x32x1xf32>
      %32 = vector.shape_cast %31 : vector<1x32x1xf32> to vector<32x1xf32>
      %33 = vector.shape_cast %30 : vector<32x1xf32> to vector<1x32x1xf32>
      tpu.vector_store %arg7[%c0_23, %c0_24, %c0_25], %33 {strides = array<i32>} : memref<1x32x1xf32, #tpu.memory_space<vmem>>, vector<1x32x1xf32>,
    } else {
    }
    return
  }
  func.func @transform_0(%arg0: i32, %arg1: i32) -> (i32, i32, i32) {
    %c0_i32 = arith.constant 0 : i32
    %c0_i32_0 = arith.constant 0 : i32
    return %arg0, %c0_i32, %arg1 : i32, i32, i32
  }
  func.func @transform_1(%arg0: i32, %arg1: i32) -> (i32, i32) {
    %c0_i32 = arith.constant 0 : i32
    %c0_i32_0 = arith.constant 0 : i32
    %c0_i32_1 = arith.constant 0 : i32
    return %c0_i32, %c0_i32_0 : i32, i32
  }
  func.func @transform_2(%arg0: i32, %arg1: i32) -> (i32, i32) {
    %c0_i32 = arith.constant 0 : i32
    %c0_i32_0 = arith.constant 0 : i32
    %c0_i32_1 = arith.constant 0 : i32
    return %c0_i32, %c0_i32_0 : i32, i32
  }
  func.func @transform_3(%arg0: i32, %arg1: i32) -> (i32, i32) {
    %c0_i32 = arith.constant 0 : i32
    %c0_i32_0 = arith.constant 0 : i32
    %c0_i32_1 = arith.constant 0 : i32
    return %c0_i32, %c0_i32_0 : i32, i32
  }
  func.func @transform_4(%arg0: i32, %arg1: i32) -> (i32, i32) {
    %c0_i32 = arith.constant 0 : i32
    %c0_i32_0 = arith.constant 0 : i32
    %c0_i32_1 = arith.constant 0 : i32
    return %c0_i32, %c0_i32_0 : i32, i32
  }
  func.func @transform_5(%arg0: i32, %arg1: i32) -> (i32, i32, i32) {
    %c0_i32 = arith.constant 0 : i32
    %c0_i32_0 = arith.constant 0 : i32
    %c0_i32_1 = arith.constant 0 : i32
    return %arg0, %c0_i32, %c0_i32_0 : i32, i32, i32
  }
}

module attributes {stable_mosaic.version = 11 : i64} {
  func.func @_gating_kernel(%arg0: i32, %arg1: i32, %arg2: memref<1x32x256xf32, #tpu.memory_space<vmem>>, %arg3: memref<1x32x1xf32, #tpu.memory_space<vmem>>, %arg4: memref<1x32x256xf32, #tpu.memory_space<vmem>>, %arg5: memref<1x32x256xf32, #tpu.memory_space<vmem>>) attributes {dimension_semantics = [#tpu.dimension_semantics<parallel>, #tpu.dimension_semantics<parallel>], iteration_bounds = array<i64: 2, 1>, scalar_prefetch = 0 : i64, scratch_operands = 0 : i64, tpu.core_type = #tpu.core_type<tc>, window_params = [{transform_indices = @transform_0, window_bounds = array<i64: 1, 32, 256>}, {transform_indices = @transform_1, window_bounds = array<i64: 1, 32, 1>}, {transform_indices = @transform_2, window_bounds = array<i64: 1, 32, 256>}, {transform_indices = @transform_3, window_bounds = array<i64: 1, 32, 256>}]} {
    %c0 = arith.constant 0 : index
    %c0_0 = arith.constant 0 : index
    %c0_1 = arith.constant 0 : index
    %0 = vector.load %arg2[%c0, %c0_0, %c0_1] : memref<1x32x256xf32, #tpu.memory_space<vmem>>, vector<1x32x256xf32>
    %1 = vector.shape_cast %0 : vector<1x32x256xf32> to vector<32x256xf32>
    %c0_2 = arith.constant 0 : index
    %c0_3 = arith.constant 0 : index
    %c0_4 = arith.constant 0 : index
    %2 = vector.load %arg3[%c0_2, %c0_3, %c0_4] : memref<1x32x1xf32, #tpu.memory_space<vmem>>, vector<1x32x1xf32>
    %3 = vector.shape_cast %2 : vector<1x32x1xf32> to vector<32x1xf32>
    %4 = vector.broadcast %3 : vector<32x1xf32> to vector<32x256xf32>
    %5 = arith.addf %1, %4 : vector<32x256xf32>
    %6 = arith.negf %5 : vector<32x256xf32>
    %7 = math.exp %6 : vector<32x256xf32>
    %cst = arith.constant 1.000000e+00 : f32
    %8 = vector.broadcast %cst : f32 to vector<32x256xf32>
    %9 = arith.addf %8, %7 : vector<32x256xf32>
    %10 = arith.divf %8, %9 : vector<32x256xf32>
    %c0_5 = arith.constant 0 : index
    %c0_6 = arith.constant 0 : index
    %c0_7 = arith.constant 0 : index
    %11 = vector.load %arg4[%c0_5, %c0_6, %c0_7] : memref<1x32x256xf32, #tpu.memory_space<vmem>>, vector<1x32x256xf32>
    %12 = vector.shape_cast %11 : vector<1x32x256xf32> to vector<32x256xf32>
    %13 = arith.mulf %12, %10 : vector<32x256xf32>
    %cst_8 = arith.constant 1.000000e+00 : f32
    %14 = vector.broadcast %cst_8 : f32 to vector<32x256xf32>
    %15 = arith.subf %14, %10 : vector<32x256xf32>
    %16 = arith.mulf %12, %15 : vector<32x256xf32>
    %17 = arith.addf %13, %16 : vector<32x256xf32>
    %c0_9 = arith.constant 0 : index
    %c0_10 = arith.constant 0 : index
    %c0_11 = arith.constant 0 : index
    %18 = vector.load %arg5[%c0_9, %c0_10, %c0_11] : memref<1x32x256xf32, #tpu.memory_space<vmem>>, vector<1x32x256xf32>
    %19 = vector.shape_cast %18 : vector<1x32x256xf32> to vector<32x256xf32>
    %20 = vector.shape_cast %17 : vector<32x256xf32> to vector<1x32x256xf32>
    tpu.vector_store %arg5[%c0_9, %c0_10, %c0_11], %20 {strides = array<i32>} : memref<1x32x256xf32, #tpu.memory_space<vmem>>, vector<1x32x256xf32>,
    return
  }
  func.func @transform_0(%arg0: i32, %arg1: i32) -> (i32, i32, i32) {
    %c0_i32 = arith.constant 0 : i32
    %c0_i32_0 = arith.constant 0 : i32
    return %arg0, %c0_i32, %arg1 : i32, i32, i32
  }
  func.func @transform_1(%arg0: i32, %arg1: i32) -> (i32, i32, i32) {
    %c0_i32 = arith.constant 0 : i32
    %c0_i32_0 = arith.constant 0 : i32
    %c0_i32_1 = arith.constant 0 : i32
    return %arg0, %c0_i32, %c0_i32_0 : i32, i32, i32
  }
  func.func @transform_2(%arg0: i32, %arg1: i32) -> (i32, i32, i32) {
    %c0_i32 = arith.constant 0 : i32
    %c0_i32_0 = arith.constant 0 : i32
    return %arg0, %c0_i32, %arg1 : i32, i32, i32
  }
  func.func @transform_3(%arg0: i32, %arg1: i32) -> (i32, i32, i32) {
    %c0_i32 = arith.constant 0 : i32
    %c0_i32_0 = arith.constant 0 : i32
    return %arg0, %c0_i32, %arg1 : i32, i32, i32
  }
}

</mosaic_0001>

<bundles_post_ra>
// kernel: glf_forward.7
= control target key start
LH: loop header
LB: loop body
LE: loop exit
PB: predicated region body
PF: predicated region fallthrough
CT: control target
= control target key end

     0   :  { %s547_s12 = smov 0   ;;  %s549_s13 = smov 0   ;;  %s608_s0 = inlined_call_operand.vmem [shape: f32[2,4,256], index: 0, kind: input, shape index: {}]   ;;  %s609_s1 = inlined_call_operand.vmem [shape: f32[32,4], index: 1, kind: input, shape index: {}]   ;;  %s610_s2 = inlined_call_operand.vmem [shape: f32[32,1], index: 2, kind: input, shape index: {}]   ;;  %s611_s3 = inlined_call_operand.vmem [shape: f32[2,32,256], index: 3, kind: output, shape index: {}]  }
   0x1   :  { %s551_s14 = smov 0  }
   0x2 LB: > { %s25_s15 = sadd.s32 1, %s519_s13  ;;  %p455_p0 = scmp.ge.s32.totalorder %s523_s14, 1  ;;  %s523_s14 = sphi %s551_s14, %s13_s14   ;;  %s519_s13 = sphi %s549_s13, %s613_s13   ;;  %s515_s12 = sphi %s547_s12, %s612_s12  }
   0x3   : > { %p27_p1 = scmp.ge.s32.totalorder %s25_s15, 2  ;;  %p158_p2 = scmp.lt.s32.totalorder %s523_s14, 3 }
   0x5   : > { %s615_s15 = smov (%p27_p1, %s25_s15), 0  ;;  %p159_p3 = pnand %p455_p0, %p158_p2 }
   0x6   : > { %p191_p4 = scmp.lt.s32.totalorder (!%p159_p3), %s515_s12, 1 }
   0x7   : > { %162 = sbr.rel (%p159_p3) target bundleno = 225 (0xe1), region = 32 }
   0xc   : > { %v525_v0 = vmov 0.0   ;;  %v217_v1 = vld [vmem:[%s610_s2 + $0x10] sm:$0xff]  ;;  %s617_s12 = smov (!%p191_p4, %s515_s12), 1  ;;  %v526_v2 = vmov 0   ;;  %v215_v3 = vld [vmem:[%s610_s2] sm:$0xff]  ;;  %v218_v4 = vld [vmem:[%s610_s2 + $0x18] sm:$0xff] }
   0xd   : > { %323 = vmatprep.mubr.f32.mxu0 %v525_v0  ;;  %335 = vmatprep.mubr.f32.mxu1 %v525_v0  ;;  %s468_s20 = sshll.u32 %s617_s12, 3  ;;  %v216_v5 = vld [vmem:[%s610_s2 + $0x8] sm:$0xff]  ;;  %vm254_vm0 = vcmask 1043456   ;;  %v210_v8 = vld [vmem:[%s609_s1] sm:$0xff]  ;;  %vm241_vm1 = vcmask 31744   ;;  %v212_v9 = vld [vmem:[%s609_s1 + $0x10] sm:$0xff] }
   0xe   : > { %499 = vset.pattern.permute.xlu1 %v526_v2  ;;  %498 = vset.pattern.permute.xlu0 %v526_v2  ;;  %s198_s27 = scalar_lea.vmem %s608_s0, %s468_s20  ;;  %v211_v10 = vld [vmem:[%s609_s1 + $0x8] sm:$0xff]  ;;  %v213_v11 = vld [vmem:[%s609_s1 + $0x18] sm:$0xff]  ;;  %s469_s9 = sshll.u32 %s617_s12, 6 }
   0xf   : > { %231 = vperm.xlu1 %499, %v217_v1   ;;  %221 = vperm.xlu0 %498, %v215_v3   ;;  %v214_v6 = vld [vmem:[%s198_s27] sm:$0xff]  ;;  %s208_s16 = scalar_lea.vmem %s611_s3, %s469_s9 }
  0x10   : > { %v240_v7 = vcombine.high %v214_v6, %v214_v6 }
  0x12   : > { %460 = vmatprep.subr.msk.mxu0 %vm254_vm0, %v240_v7  ;;  %470 = vmatprep.subr.msk.mxu1 %vm254_vm0, %v240_v7 }
  0x13   : > { %236 = vperm.xlu1 %499, %v218_v4   ;;  %226 = vperm.xlu0 %498, %v216_v5  }
  0x14   : > { %461 = vmatpush1.msk.msra.mxu0 %vm254_vm0, %v214_v6  ;;  %471 = vmatpush1.msk.msra.mxu1 %vm254_vm0, %v214_v6 }
  0x15   : > { %462 = vmatmul.mubr.msk.f32.vlgmr.msra.gmra.mxu0 %vm241_vm1, %v210_v8  ;;  %464 = vmatmul.mubr.msk.f32.vlgmr.msra.gmra.mxu1 %vm241_vm1, %v212_v9 }
  0x16   : > { %329 = vmatprep.mubr.f32.mxu0 %v525_v0  ;;  %341 = vmatprep.mubr.f32.mxu1 %v525_v0 }
  0x19   : > { %463 = vmatmul.mubr.msk.f32.gmra.mxu0 %vm241_vm1, %v211_v10  ;;  %465 = vmatmul.mubr.msk.f32.gmra.mxu1 %vm241_vm1, %v213_v11 }
  0x8a   : > { %v232_v12 = vpop.permute.xlu1 %231  ;;  %v222_v13 = vpop.permute.xlu0 %221 }
  0x8e   : > { %v237_v22 = vpop.permute.xlu1 %236  ;;  %v227_v23 = vpop.permute.xlu0 %226 }
  0xd5   : > { %v325_v14 = vpop.f32.mrf.mxu0  ;;  %v337_v15 = vpop.f32.mrf.mxu1 }
  0xd6   : > { %v326_v16 = vadd.f32 %v325_v14, %v222_v13  ;;  %v338_v17 = vadd.f32 %v337_v15, %v232_v12 }
  0xd7   : > { %v327_v18 = vpop.f32.mrf.mxu0  ;;  %v339_v19 = vpop.f32.mrf.mxu1 }
  0xd8   : > { %v348_v20 = vmax.f32 %v326_v16, 0.0  ;;  %v352_v21 = vmax.f32 %v338_v17, 0.0  ;;  %v328_v24 = vadd.f32 %v327_v18, %v222_v13  ;;  %v340_v25 = vadd.f32 %v339_v19, %v232_v12 }
  0xd9   : > { %v331_v26 = vpop.f32.mrf.mxu0  ;;  %v343_v27 = vpop.f32.mrf.mxu1 }
  0xda   : > { %356 = vst [vmem:[%s208_s16] sm:$0xff] %v348_v20  ;;  %360 = vst [vmem:[%s208_s16 + $0x20] sm:$0xff] %v352_v21  ;;  %v349_v28 = vmax.f32 %v328_v24, 0.0  ;;  %v353_v29 = vmax.f32 %v340_v25, 0.0  ;;  %v332_v30 = vadd.f32 %v331_v26, %v227_v23  ;;  %v344_v31 = vadd.f32 %v343_v27, %v237_v22 }
  0xdb   : > { %v333_v32 = vpop.f32.mrf.mxu0  ;;  %v345_v33 = vpop.f32.mrf.mxu1 }
  0xdc   : > { %357 = vst [vmem:[%s208_s16 + $0x8] sm:$0xff] %v349_v28  ;;  %361 = vst [vmem:[%s208_s16 + $0x28] sm:$0xff] %v353_v29  ;;  %v350_v34 = vmax.f32 %v332_v30, 0.0  ;;  %v354_v35 = vmax.f32 %v344_v31, 0.0  ;;  %v334_v36 = vadd.f32 %v333_v32, %v227_v23  ;;  %v346_v37 = vadd.f32 %v345_v33, %v237_v22 }
  0xde   : > { %358 = vst [vmem:[%s208_s16 + $0x10] sm:$0xff] %v350_v34  ;;  %362 = vst [vmem:[%s208_s16 + $0x30] sm:$0xff] %v354_v35  ;;  %v351_v38 = vmax.f32 %v334_v36, 0.0  ;;  %v355_v39 = vmax.f32 %v346_v37, 0.0 }
  0xe0   : > { %359 = vst [vmem:[%s208_s16 + $0x18] sm:$0xff] %v351_v38  ;;  %363 = vst [vmem:[%s208_s16 + $0x38] sm:$0xff] %v355_v39 }
  0xe1 PF: > { %s13_s14 = sadd.s32 1, %s523_s14   ;;  %s612_s12 = smov %s519_s13 }
  0xe2   : > { %p10_p5 = scmp.ge.s32.totalorder %s13_s14, 4   ;;  %s613_s13 = smov %s615_s15 }
  0xe4   :  { %12 = sbr.rel (!%p10_p5) target bundleno = 2 (0x2), region = 62 }

// kernel: glf_forward.6
= control target key start
LH: loop header
LB: loop body
LE: loop exit
PB: predicated region body
PF: predicated region fallthrough
CT: control target
= control target key end

     0   :  { %s743_s18 = smov 0   ;;  %s745_s19 = smov 0   ;;  %s840_s0 = inlined_call_operand.vmem [shape: f32[2,4,256], index: 0, kind: input, shape index: {}]   ;;  %s841_s1 = inlined_call_operand.vmem [shape: f32[32,4], index: 1, kind: input, shape index: {}]   ;;  %s842_s2 = inlined_call_operand.vmem [shape: f32[32,1], index: 2, kind: input, shape index: {}]   ;;  %s843_s3 = inlined_call_operand.vmem [shape: f32[32,32], index: 3, kind: input, shape index: {}]   ;;  %s844_s4 = inlined_call_operand.vmem [shape: f32[32,1], index: 4, kind: input, shape index: {}]   ;;  %s845_s5 = inlined_call_operand.vmem [shape: f32[2,32,256], index: 5, kind: output, shape index: {}]  }
   0x1   :  { %s747_s20 = smov 0  }
   0x2 LB: > { %s27_s21 = sadd.s32 1, %s705_s19  ;;  %p639_p0 = scmp.ge.s32.totalorder %s709_s20, 1  ;;  %s709_s20 = sphi %s747_s20, %s15_s20   ;;  %s705_s19 = sphi %s745_s19, %s847_s19   ;;  %s701_s18 = sphi %s743_s18, %s846_s18  }
   0x3   : > { %p29_p1 = scmp.ge.s32.totalorder %s27_s21, 2  ;;  %p208_p2 = scmp.lt.s32.totalorder %s709_s20, 3 }
   0x5   : > { %s849_s21 = smov (%p29_p1, %s27_s21), 0  ;;  %p209_p3 = pnand %p639_p0, %p208_p2 }
   0x6   : > { %p245_p4 = scmp.lt.s32.totalorder (!%p209_p3), %s701_s18, 1 }
   0x7   : > { %212 = sbr.rel (%p209_p3) target bundleno = 450 (0x1c2), region = 40 }
   0xc   : > { %v711_v0 = vmov 0.0   ;;  %v270_v1 = vld [vmem:[%s842_s2 + $0x8] sm:$0xff]  ;;  %s851_s18 = smov (!%p245_p4, %s701_s18), 1  ;;  %v712_v2 = vmov 0   ;;  %v272_v3 = vld [vmem:[%s842_s2 + $0x18] sm:$0xff]  ;;  %v269_v4 = vld [vmem:[%s842_s2] sm:$0xff] }
   0xd   : > { %377 = vmatprep.mubr.f32.mxu0 %v711_v0  ;;  %515 = vmatprep.mubr.f32.mxu1 %v711_v0  ;;  %s656_s26 = sshll.u32 %s851_s18, 3  ;;  %v271_v5 = vld [vmem:[%s842_s2 + $0x10] sm:$0xff]  ;;  %vm308_vm0 = vcmask 1043456   ;;  %v264_v8 = vld [vmem:[%s841_s1] sm:$0xff]  ;;  %vm295_vm1 = vcmask 31744   ;;  %v415_v10 = vld [vmem:[%s844_s4 + $0x8] sm:$0xff] }
   0xe   : > { %685 = vset.pattern.permute.xlu1 %v712_v2  ;;  %684 = vset.pattern.permute.xlu0 %v712_v2  ;;  %s252_s8 = scalar_lea.vmem %s840_s0, %s656_s26  ;;  %v414_v9 = vld [vmem:[%s844_s4] sm:$0xff]  ;;  %v265_v11 = vld [vmem:[%s841_s1 + $0x8] sm:$0xff]  ;;  %v416_v12 = vld [vmem:[%s844_s4 + $0x10] sm:$0xff]  ;;  %vm438_vm2 = vcmask 261120   ;;  %s657_s12 = sshll.u32 %s851_s18, 6 }
   0xf   : > { %280 = vperm.xlu1 %685, %v270_v1   ;;  %290 = vperm.xlu0 %684, %v272_v3   ;;  %v268_v6 = vld [vmem:[%s252_s8] sm:$0xff]  ;;  %v417_v13 = vld [vmem:[%s844_s4 + $0x18] sm:$0xff]  ;;  %v266_v14 = vld [vmem:[%s841_s1 + $0x10] sm:$0xff]  ;;  %s262_s15 = scalar_lea.vmem %s845_s5, %s657_s12 }
  0x10   : > { %v294_v7 = vcombine.high %v268_v6, %v268_v6  ;;  %v267_v15 = vld [vmem:[%s841_s1 + $0x18] sm:$0xff]  ;;  %v410_v44 = vld [vmem:[%s843_s3] sm:$0xff]  ;;  %v411_v45 = vld [vmem:[%s843_s3 + $0x8] sm:$0xff] }
  0x11   : > { %v412_v46 = vld [vmem:[%s843_s3 + $0x10] sm:$0xff]  ;;  %v413_v47 = vld [vmem:[%s843_s3 + $0x18] sm:$0xff] }
  0x12   : > { %644 = vmatprep.subr.msk.mxu0 %vm308_vm0, %v294_v7 }
  0x13   : > { %275 = vperm.xlu1 %685, %v269_v4   ;;  %285 = vperm.xlu0 %684, %v271_v5  }
  0x14   : > { %645 = vmatpush1.msk.msra.mxu0 %vm308_vm0, %v268_v6 }
  0x15   : > { %646 = vmatmul.mubr.msk.f32.vlgmr.msra.gmra.mxu0 %vm295_vm1, %v264_v8 }
  0x16   : > { %383 = vmatprep.mubr.f32.mxu0 %v711_v0 }
  0x17   : > { %420 = vperm.xlu0 %684, %v414_v9   ;;  %425 = vperm.xlu1 %685, %v415_v10  }
  0x19   : > { %647 = vmatmul.mubr.msk.f32.gmra.mxu0 %vm295_vm1, %v265_v11 }
  0x1a   : > { %389 = vmatprep.mubr.f32.mxu0 %v711_v0 }
  0x1b   : > { %430 = vperm.xlu0 %684, %v416_v12   ;;  %435 = vperm.xlu1 %685, %v417_v13  }
  0x1d   : > { %648 = vmatmul.mubr.msk.f32.gmra.mxu0 %vm295_vm1, %v266_v14 }
  0x1e   : > { %395 = vmatprep.mubr.f32.mxu0 %v711_v0 }
  0x21   : > { %649 = vmatmul.mubr.msk.f32.gmra.mxu0 %vm295_vm1, %v267_v15 }
  0x8a   : > { %v291_v20 = vpop.permute.xlu0 %290  ;;  %v281_v23 = vpop.permute.xlu1 %280 }
  0x8e   : > { %v286_v25 = vpop.permute.xlu0 %285  ;;  %v276_v31 = vpop.permute.xlu1 %275 }
  0x92   : > { %v421_v48 = vpop.permute.xlu0 %420  ;;  %v426_v53 = vpop.permute.xlu1 %425 }
  0x96   : > { %v431_v58 = vpop.permute.xlu0 %430  ;;  %v436_v63 = vpop.permute.xlu1 %435 }
  0xd5   : > { %v379_v16 = vpop.f32.mrf.mxu0 }
  0xd6   : > { %v380_v38 = vadd.f32 %v379_v16, %v276_v31 }
  0xd7   : > { %v381_v17 = vpop.f32.mrf.mxu0 }
  0xd8   : > { %v382_v36 = vadd.f32 %v381_v17, %v276_v31  ;;  %v402_v43 = vmax.f32 %v380_v38, 0.0 }
  0xd9   : > { %v385_v18 = vpop.f32.mrf.mxu0 }
  0xda   : > { %v386_v34 = vadd.f32 %v385_v18, %v281_v23  ;;  %v403_v42 = vmax.f32 %v382_v36, 0.0 }
  0xdb   : > { %v387_v19 = vpop.f32.mrf.mxu0 }
  0xdc   : > { %v388_v32 = vadd.f32 %v387_v19, %v281_v23  ;;  %v404_v41 = vmax.f32 %v386_v34, 0.0 }
  0xdd   : > { %v391_v21 = vpop.f32.mrf.mxu0 }
  0xde   : > { %v392_v30 = vadd.f32 %v391_v21, %v286_v25  ;;  %v405_v40 = vmax.f32 %v388_v32, 0.0 }
  0xdf   : > { %v393_v22 = vpop.f32.mrf.mxu0 }
  0xe0   : > { %v394_v28 = vadd.f32 %v393_v22, %v286_v25  ;;  %v406_v39 = vmax.f32 %v392_v30, 0.0 }
  0xe1   : > { %v397_v24 = vpop.f32.mrf.mxu0 }
  0xe2   : > { %v398_v26 = vadd.f32 %v397_v24, %v291_v20  ;;  %v407_v37 = vmax.f32 %v394_v28, 0.0 }
  0xe3   : > { %v399_v27 = vpop.f32.mrf.mxu0 }
  0xe4   : > { %v400_v29 = vadd.f32 %v399_v27, %v291_v20  ;;  %v408_v35 = vmax.f32 %v398_v26, 0.0 }
  0xe6   : > { %v409_v33 = vmax.f32 %v400_v29, 0.0 }
  0xe8   : > { %475 = vmatprep.subr.mxu1 %v409_v33 }
  0xe9   : > { %476 = vmatpush1.msra.mxu1 %v408_v35 }
  0xea   : > { %477 = vmatprep.subr.mxu1 %v407_v37 }
  0xeb   : > { %478 = vmatpush1.msra.mxu1 %v406_v39 }
  0xec   : > { %479 = vmatprep.subr.mxu1 %v405_v40 }
  0xed   : > { %480 = vmatpush1.msra.mxu1 %v404_v41 }
  0xee   : > { %481 = vmatprep.subr.mxu1 %v403_v42 }
  0xef   : > { %482 = vmatpush1.msra.mxu1 %v402_v43 }
  0xf0   : > { %650 = vmatmul.mubr.msk.f32.vlgmr.msra.gmra.mxu1 %vm438_vm2, %v410_v44 }
  0xf1   : > { %521 = vmatprep.mubr.f32.mxu1 %v711_v0 }
  0xf4   : > { %651 = vmatmul.mubr.msk.f32.gmra.mxu1 %vm438_vm2, %v411_v45 }
  0xf5   : > { %527 = vmatprep.mubr.f32.mxu1 %v711_v0 }
  0xf8   : > { %652 = vmatmul.mubr.msk.f32.gmra.mxu1 %vm438_vm2, %v412_v46 }
  0xf9   : > { %533 = vmatprep.mubr.f32.mxu1 %v711_v0 }
  0xfc   : > { %653 = vmatmul.mubr.msk.f32.gmra.mxu1 %vm438_vm2, %v413_v47 }
 0x1b0   : > { %v517_v49 = vpop.f32.mrf.mxu1 }
 0x1b1   : > { %v518_v50 = vadd.f32 %v517_v49, %v421_v48 }
 0x1b2   : > { %v519_v51 = vpop.f32.mrf.mxu1 }
 0x1b3   : > { %540 = vst [vmem:[%s262_s15] sm:$0xff] %v518_v50  ;;  %v520_v52 = vadd.f32 %v519_v51, %v421_v48 }
 0x1b4   : > { %v523_v54 = vpop.f32.mrf.mxu1 }
 0x1b5   : > { %541 = vst [vmem:[%s262_s15 + $0x8] sm:$0xff] %v520_v52  ;;  %v524_v55 = vadd.f32 %v523_v54, %v426_v53 }
 0x1b6   : > { %v525_v56 = vpop.f32.mrf.mxu1 }
 0x1b7   : > { %542 = vst [vmem:[%s262_s15 + $0x10] sm:$0xff] %v524_v55  ;;  %v526_v57 = vadd.f32 %v525_v56, %v426_v53 }
 0x1b8   : > { %v529_v59 = vpop.f32.mrf.mxu1 }
 0x1b9   : > { %543 = vst [vmem:[%s262_s15 + $0x18] sm:$0xff] %v526_v57  ;;  %v530_v60 = vadd.f32 %v529_v59, %v431_v58 }
 0x1ba   : > { %v531_v61 = vpop.f32.mrf.mxu1 }
 0x1bb   : > { %544 = vst [vmem:[%s262_s15 + $0x20] sm:$0xff] %v530_v60  ;;  %v532_v62 = vadd.f32 %v531_v61, %v431_v58 }
 0x1bc   : > { %v535_v0 = vpop.f32.mrf.mxu1 }
 0x1bd   : > { %545 = vst [vmem:[%s262_s15 + $0x28] sm:$0xff] %v532_v62  ;;  %v536_v1 = vadd.f32 %v535_v0, %v436_v63 }
 0x1be   : > { %v537_v2 = vpop.f32.mrf.mxu1 }
 0x1bf   : > { %546 = vst [vmem:[%s262_s15 + $0x30] sm:$0xff] %v536_v1  ;;  %v538_v3 = vadd.f32 %v537_v2, %v436_v63 }
 0x1c1   : > { %547 = vst [vmem:[%s262_s15 + $0x38] sm:$0xff] %v538_v3 }
 0x1c2 PF: > { %s15_s20 = sadd.s32 1, %s709_s20   ;;  %s846_s18 = smov %s705_s19 }
 0x1c3   : > { %p12_p5 = scmp.ge.s32.totalorder %s15_s20, 4   ;;  %s847_s19 = smov %s849_s21 }
 0x1c5   :  { %14 = sbr.rel (!%p12_p5) target bundleno = 2 (0x2), region = 70 }

// kernel: glf_forward.8
= control target key start
LH: loop header
LB: loop body
LE: loop exit
PB: predicated region body
PF: predicated region fallthrough
CT: control target
= control target key end

     0   :  { %s691_s18 = smov 0   ;;  %s693_s19 = smov 0   ;;  %s781_s0 = inlined_call_operand.vmem [shape: f32[2,64,256], index: 0, kind: input, shape index: {}]   ;;  %s782_s1 = inlined_call_operand.vmem [shape: f32[8,64], index: 1, kind: input, shape index: {}]   ;;  %s783_s2 = inlined_call_operand.vmem [shape: f32[8,1], index: 2, kind: input, shape index: {}]   ;;  %s784_s3 = inlined_call_operand.vmem [shape: f32[32,8], index: 3, kind: input, shape index: {}]   ;;  %s785_s4 = inlined_call_operand.vmem [shape: f32[32,1], index: 4, kind: input, shape index: {}]   ;;  %s786_s5 = inlined_call_operand.vmem [shape: f32[2,32,256], index: 5, kind: output, shape index: {}]  }
   0x1   :  { %s695_s20 = smov 0  }
   0x2 LB: > { %s27_s21 = sadd.s32 1, %s653_s19  ;;  %p593_p0 = scmp.ge.s32.totalorder %s657_s20, 1  ;;  %s657_s20 = sphi %s695_s20, %s15_s20   ;;  %s653_s19 = sphi %s693_s19, %s788_s19   ;;  %s649_s18 = sphi %s691_s18, %s787_s18  }
   0x3   : > { %p29_p1 = scmp.ge.s32.totalorder %s27_s21, 2  ;;  %p208_p2 = scmp.lt.s32.totalorder %s657_s20, 3 }
   0x5   : > { %s790_s21 = smov (%p29_p1, %s27_s21), 0  ;;  %p209_p3 = pnand %p593_p0, %p208_p2 }
   0x6   : > { %p245_p4 = scmp.lt.s32.totalorder (!%p209_p3), %s649_s18, 1 }
   0x7   : > { %212 = sbr.rel (%p209_p3) target bundleno = 443 (0x1bb), region = 40 }
   0xc   : > { %v281_v0 = vld [vmem:[%s783_s2] sm:$0xff]  ;;  %v659_v1 = vmov 0.0   ;;  %v660_v2 = vmov 0   ;;  %s792_s18 = smov (!%p245_p4, %s649_s18), 1  ;;  %v371_v8 = vld [vmem:[%s785_s4 + $0x18] sm:$0xff]  ;;  %vm287_vm0 = vcmask 523264  }
   0xd   : > { %355 = vmatprep.mubr.f32.mxu0 %v659_v1  ;;  %633 = vset.pattern.permute.xlu0 %v660_v2  ;;  %v368_v3 = vld [vmem:[%s785_s4] sm:$0xff]  ;;  %s605_s26 = sshll.u32 %s792_s18, 7  ;;  %v369_v22 = vld [vmem:[%s785_s4 + $0x8] sm:$0xff]  ;;  %v370_v23 = vld [vmem:[%s785_s4 + $0x10] sm:$0xff]  ;;  %vm392_vm1 = vcmask 64512   ;;  %s606_s25 = sshll.u32 %s792_s18, 6 }
   0xe   : > { %284 = vperm.xlu0 %633, %v281_v0   ;;  %469 = vmatprep.mubr.f32.mxu1 %v659_v1  ;;  %s723_s29 = scalar_lea.vmem %s781_s0, %s605_s26  ;;  %v264_v21 = vld [vmem:[%s782_s1] sm:$0xff]  ;;  %v365_v32 = vld [vmem:[%s784_s3 + $0x8] sm:$0xff]  ;;  %v366_v33 = vld [vmem:[%s784_s3 + $0x10] sm:$0xff]  ;;  %s262_s28 = scalar_lea.vmem %s786_s5, %s606_s25 }
   0xf   : > { %634 = vset.pattern.permute.xlu1 %v660_v2  ;;  %v280_v4 = vld [vmem:[%s723_s29 + $0x78] sm:$0xff]  ;;  %v279_v5 = vld [vmem:[%s723_s29 + $0x70] sm:$0xff]  ;;  %v278_v6 = vld [vmem:[%s723_s29 + $0x68] sm:$0xff] }
  0x10   : > { %307 = vmatprep.subr.mxu0 %v280_v4  ;;  %v277_v7 = vld [vmem:[%s723_s29 + $0x60] sm:$0xff]  ;;  %v276_v9 = vld [vmem:[%s723_s29 + $0x58] sm:$0xff]  ;;  %v275_v10 = vld [vmem:[%s723_s29 + $0x50] sm:$0xff]  ;;  %379 = vperm.xlu1 %634, %v369_v22  }
  0x11   : > { %308 = vmatpush1.msra.mxu0 %v279_v5  ;;  %v274_v11 = vld [vmem:[%s723_s29 + $0x48] sm:$0xff]  ;;  %v273_v12 = vld [vmem:[%s723_s29 + $0x40] sm:$0xff]  ;;  %v272_v13 = vld [vmem:[%s723_s29 + $0x38] sm:$0xff] }
  0x12   : > { %374 = vperm.xlu0 %633, %v368_v3   ;;  %309 = vmatprep.subr.mxu0 %v278_v6  ;;  %v271_v14 = vld [vmem:[%s723_s29 + $0x30] sm:$0xff]  ;;  %v270_v15 = vld [vmem:[%s723_s29 + $0x28] sm:$0xff]  ;;  %v269_v16 = vld [vmem:[%s723_s29 + $0x20] sm:$0xff] }
  0x13   : > { %310 = vmatpush1.msra.mxu0 %v277_v7  ;;  %v268_v17 = vld [vmem:[%s723_s29 + $0x18] sm:$0xff]  ;;  %v267_v18 = vld [vmem:[%s723_s29 + $0x10] sm:$0xff]  ;;  %v266_v19 = vld [vmem:[%s723_s29 + $0x8] sm:$0xff] }
  0x14   : > { %311 = vmatprep.subr.mxu0 %v276_v9  ;;  %v265_v20 = vld [vmem:[%s723_s29] sm:$0xff]  ;;  %384 = vperm.xlu1 %634, %v370_v23   ;;  %v367_v34 = vld [vmem:[%s784_s3 + $0x18] sm:$0xff] }
  0x15   : > { %312 = vmatpush1.msra.mxu0 %v275_v10  ;;  %v364_v31 = vld [vmem:[%s784_s3] sm:$0xff] }
  0x16   : > { %389 = vperm.xlu0 %633, %v371_v8   ;;  %313 = vmatprep.subr.mxu0 %v274_v11 }
  0x17   : > { %314 = vmatpush1.msra.mxu0 %v273_v12 }
  0x18   : > { %315 = vmatprep.subr.mxu0 %v272_v13 }
  0x19   : > { %316 = vmatpush1.msra.mxu0 %v271_v14 }
  0x1a   : > { %317 = vmatprep.subr.mxu0 %v270_v15 }
  0x1b   : > { %318 = vmatpush1.msra.mxu0 %v269_v16 }
  0x1c   : > { %319 = vmatprep.subr.mxu0 %v268_v17 }
  0x1d   : > { %320 = vmatpush1.msra.mxu0 %v267_v18 }
  0x1e   : > { %321 = vmatprep.subr.mxu0 %v266_v19 }
  0x1f   : > { %322 = vmatpush1.msra.mxu0 %v265_v20 }
  0x20   : > { %598 = vmatmul.mubr.msk.f32.vlgmr.msra.gmra.mxu0 %vm287_vm0, %v264_v21 }
  0x89   : > { %v285_v25 = vpop.permute.xlu0 %284 }
  0x8b   : > { %v380_v37 = vpop.permute.xlu1 %379 }
  0x8d   : > { %v375_v35 = vpop.permute.xlu0 %374 }
  0x8f   : > { %v385_v44 = vpop.permute.xlu1 %384 }
  0x91   : > { %v390_v50 = vpop.permute.xlu0 %389 }
  0xe0   : > { %v357_v24 = vpop.f32.mrf.mxu0 }
  0xe1   : > { %v358_v26 = vadd.f32 %v357_v24, %v285_v25 }
  0xe2   : > { %v359_v27 = vpop.f32.mrf.mxu0 }
  0xe3   : > { %v360_v28 = vadd.f32 %v359_v27, %v285_v25  ;;  %v362_v30 = vmax.f32 %v358_v26, 0.0 }
  0xe5   : > { %v363_v29 = vmax.f32 %v360_v28, 0.0 }
  0xe7   : > { %435 = vmatprep.subr.mxu1 %v363_v29 }
  0xe8   : > { %436 = vmatpush1.msra.mxu1 %v362_v30 }
  0xe9   : > { %599 = vmatmul.mubr.msk.f32.vlgmr.msra.gmra.mxu1 %vm392_vm1, %v364_v31 }
  0xea   : > { %475 = vmatprep.mubr.f32.mxu1 %v659_v1 }
  0xed   : > { %600 = vmatmul.mubr.msk.f32.gmra.mxu1 %vm392_vm1, %v365_v32 }
  0xee   : > { %481 = vmatprep.mubr.f32.mxu1 %v659_v1 }
  0xf1   : > { %601 = vmatmul.mubr.msk.f32.gmra.mxu1 %vm392_vm1, %v366_v33 }
  0xf2   : > { %487 = vmatprep.mubr.f32.mxu1 %v659_v1 }
  0xf5   : > { %602 = vmatmul.mubr.msk.f32.gmra.mxu1 %vm392_vm1, %v367_v34 }
 0x1a9   : > { %v471_v36 = vpop.f32.mrf.mxu1 }
 0x1aa   : > { %v472_v38 = vadd.f32 %v471_v36, %v375_v35 }
 0x1ab   : > { %v473_v39 = vpop.f32.mrf.mxu1 }
 0x1ac   : > { %494 = vst [vmem:[%s262_s28] sm:$0xff] %v472_v38  ;;  %v474_v40 = vadd.f32 %v473_v39, %v375_v35 }
 0x1ad   : > { %v477_v41 = vpop.f32.mrf.mxu1 }
 0x1ae   : > { %495 = vst [vmem:[%s262_s28 + $0x8] sm:$0xff] %v474_v40  ;;  %v478_v42 = vadd.f32 %v477_v41, %v380_v37 }
 0x1af   : > { %v479_v43 = vpop.f32.mrf.mxu1 }
 0x1b0   : > { %496 = vst [vmem:[%s262_s28 + $0x10] sm:$0xff] %v478_v42  ;;  %v480_v45 = vadd.f32 %v479_v43, %v380_v37 }
 0x1b1   : > { %v483_v46 = vpop.f32.mrf.mxu1 }
 0x1b2   : > { %497 = vst [vmem:[%s262_s28 + $0x18] sm:$0xff] %v480_v45  ;;  %v484_v47 = vadd.f32 %v483_v46, %v385_v44 }
 0x1b3   : > { %v485_v48 = vpop.f32.mrf.mxu1 }
 0x1b4   : > { %498 = vst [vmem:[%s262_s28 + $0x20] sm:$0xff] %v484_v47  ;;  %v486_v49 = vadd.f32 %v485_v48, %v385_v44 }
 0x1b5   : > { %v489_v51 = vpop.f32.mrf.mxu1 }
 0x1b6   : > { %499 = vst [vmem:[%s262_s28 + $0x28] sm:$0xff] %v486_v49  ;;  %v490_v52 = vadd.f32 %v489_v51, %v390_v50 }
 0x1b7   : > { %v491_v53 = vpop.f32.mrf.mxu1 }
 0x1b8   : > { %500 = vst [vmem:[%s262_s28 + $0x30] sm:$0xff] %v490_v52  ;;  %v492_v54 = vadd.f32 %v491_v53, %v390_v50 }
 0x1ba   : > { %501 = vst [vmem:[%s262_s28 + $0x38] sm:$0xff] %v492_v54 }
 0x1bb PF: > { %s15_s20 = sadd.s32 1, %s657_s20   ;;  %s787_s18 = smov %s653_s19 }
 0x1bc   : > { %p12_p5 = scmp.ge.s32.totalorder %s15_s20, 4   ;;  %s788_s19 = smov %s790_s21 }
 0x1be   :  { %14 = sbr.rel (!%p12_p5) target bundleno = 2 (0x2), region = 70 }

// kernel: glf_forward.11
= control target key start
LH: loop header
LB: loop body
LE: loop exit
PB: predicated region body
PF: predicated region fallthrough
CT: control target
= control target key end

     0   :  { %s650_s12 = smov 0   ;;  %s652_s13 = smov 0   ;;  %s714_s0 = inlined_call_operand.vmem [shape: f32[2,32,256], index: 0, kind: input, shape index: {}]   ;;  %s715_s1 = inlined_call_operand.vmem [shape: f32[2,32,1], index: 1, kind: input, shape index: {}]   ;;  %s716_s2 = inlined_call_operand.vmem [shape: f32[2,32,256], index: 2, kind: input, shape index: {}]   ;;  %s717_s3 = inlined_call_operand.vmem [shape: f32[2,32,256], index: 3, kind: output, shape index: {}]  }
   0x1   :  { %s654_s14 = smov 0  }
   0x2 LB: > { %s25_s15 = sadd.s32 1, %s623_s13  ;;  %p523_p0 = scmp.ge.s32.totalorder %s627_s14, 1  ;;  %s627_s14 = sphi %s654_s14, %s13_s14   ;;  %s623_s13 = sphi %s652_s13, %s719_s13   ;;  %s619_s12 = sphi %s650_s12, %s718_s12  }
   0x3   : > { %p27_p1 = scmp.ge.s32.totalorder %s25_s15, 2  ;;  %p185_p2 = scmp.lt.s32.totalorder %s627_s14, 3 }
   0x5   : > { %s721_s15 = smov (%p27_p1, %s25_s15), 0  ;;  %p186_p3 = pnand %p523_p0, %p185_p2 }
   0x6   : > { %p232_p4 = scmp.lt.s32.totalorder (!%p186_p3), %s619_s12, 1 }
   0x7   : > { %189 = sbr.rel (%p186_p3) target bundleno = 188 (0xbc), region = 32 }
   0xc   : > { %v629_v0 = vmov 0   ;;  %s723_s12 = smov (!%p232_p4, %s619_s12), 1 }
   0xd   : > { %572 = vset.pattern.permute.xlu1 %v629_v0  ;;  %571 = vset.pattern.permute.xlu0 %v629_v0  ;;  %s543_s16 = sshll.u32 %s723_s12, 5  ;;  %s671_s20 = sshll.u32 %s723_s12, 6 }
   0xe   : > { %s245_s19 = scalar_lea.vmem %s715_s1, %s543_s16  ;;  %s239_s23 = scalar_lea.vmem %s714_s0, %s671_s20 }
   0xf   : > { %v276_v1 = vld [vmem:[%s245_s19 + $0x10] sm:$0xff]  ;;  %v274_v2 = vld [vmem:[%s245_s19] sm:$0xff]  ;;  %v277_v3 = vld [vmem:[%s245_s19 + $0x18] sm:$0xff]  ;;  %s681_s26 = scalar_lea.vmem %s716_s2, %s671_s20  ;;  %s691_s29 = scalar_lea.vmem %s717_s3, %s671_s20 }
  0x10   : > { %290 = vperm.xlu1 %572, %v276_v1   ;;  %280 = vperm.xlu0 %571, %v274_v2   ;;  %v275_v4 = vld [vmem:[%s245_s19 + $0x8] sm:$0xff]  ;;  %v270_v5 = vld [vmem:[%s239_s23 + $0x20] sm:$0xff]  ;;  %v272_v15 = vld [vmem:[%s239_s23 + $0x30] sm:$0xff] }
  0x11   : > { %v271_v6 = vld [vmem:[%s239_s23 + $0x28] sm:$0xff]  ;;  %v266_v7 = vld [vmem:[%s239_s23] sm:$0xff]  ;;  %v273_v16 = vld [vmem:[%s239_s23 + $0x38] sm:$0xff] }
  0x12   : > { %v267_v8 = vld [vmem:[%s239_s23 + $0x8] sm:$0xff]  ;;  %v268_v17 = vld [vmem:[%s239_s23 + $0x10] sm:$0xff]  ;;  %v269_v18 = vld [vmem:[%s239_s23 + $0x18] sm:$0xff] }
  0x13   : > { %v358_v50 = vld [vmem:[%s681_s26 + $0x20] sm:$0xff]  ;;  %v359_v52 = vld [vmem:[%s681_s26 + $0x28] sm:$0xff]  ;;  %v360_v2 = vld [vmem:[%s681_s26 + $0x30] sm:$0xff] }
  0x14   : > { %295 = vperm.xlu1 %572, %v277_v3   ;;  %285 = vperm.xlu0 %571, %v275_v4   ;;  %v354_v56 = vld [vmem:[%s681_s26] sm:$0xff]  ;;  %v355_v60 = vld [vmem:[%s681_s26 + $0x8] sm:$0xff] }
  0x8b   : > { %v291_v9 = vpop.permute.xlu1 %290  ;;  %v281_v10 = vpop.permute.xlu0 %280 }
  0x8c   : > { %v302_v11 = vadd.f32 %v291_v9, %v270_v5  ;;  %v303_v12 = vadd.f32 %v291_v9, %v271_v6  ;;  %v298_v13 = vadd.f32 %v281_v10, %v266_v7  ;;  %v299_v14 = vadd.f32 %v281_v10, %v267_v8  ;;  %v361_v7 = vld [vmem:[%s681_s26 + $0x38] sm:$0xff] }
  0x8e   : > { %v536_v19 = vmul.f32 -1.442695, %v302_v11  ;;  %v537_v20 = vmul.f32 -1.442695, %v303_v12  ;;  %v532_v21 = vmul.f32 -1.442695, %v298_v13 }
  0x8f   : > { %v533_v22 = vmul.f32 -1.442695, %v299_v14  ;;  %v296_v23 = vpop.permute.xlu1 %295  ;;  %v286_v24 = vpop.permute.xlu0 %285  ;;  %v356_v14 = vld [vmem:[%s681_s26 + $0x10] sm:$0xff] }
  0x90   : > { %573 = vpow2.f32 %v536_v19  ;;  %v304_v25 = vadd.f32 %v296_v23, %v272_v15  ;;  %v305_v26 = vadd.f32 %v296_v23, %v273_v16  ;;  %v300_v27 = vadd.f32 %v286_v24, %v268_v17  ;;  %v357_v19 = vld [vmem:[%s681_s26 + $0x18] sm:$0xff] }
  0x91   : > { %575 = vpow2.f32 %v537_v20  ;;  %v301_v28 = vadd.f32 %v286_v24, %v269_v18 }
  0x92   : > { %577 = vpow2.f32 %v532_v21  ;;  %v538_v29 = vmul.f32 -1.442695, %v304_v25  ;;  %v539_v30 = vmul.f32 -1.442695, %v305_v26  ;;  %v534_v31 = vmul.f32 -1.442695, %v300_v27 }
  0x93   : > { %579 = vpow2.f32 %v533_v22  ;;  %v535_v32 = vmul.f32 -1.442695, %v301_v28 }
  0x94   : > { %581 = vpow2.f32 %v538_v29 }
  0x95   : > { %583 = vpow2.f32 %v539_v30 }
  0x96   : > { %585 = vpow2.f32 %v534_v31 }
  0x97   : > { %587 = vpow2.f32 %v535_v32 }
  0x9d   : > { %v574_v33 = vpop.eup %573 }
  0x9e   : > { %v576_v34 = vpop.eup %575  ;;  %v334_v35 = vadd.f32 1.0, %v574_v33 }
  0x9f   : > { %v578_v36 = vpop.eup %577  ;;  %v335_v37 = vadd.f32 1.0, %v576_v34 }
  0xa0   : > { %v580_v38 = vpop.eup %579  ;;  %589 = vrcp.f32 %v334_v35  ;;  %v330_v39 = vadd.f32 1.0, %v578_v36 }
  0xa1   : > { %v582_v40 = vpop.eup %581  ;;  %591 = vrcp.f32 %v335_v37  ;;  %v331_v41 = vadd.f32 1.0, %v580_v38 }
  0xa2   : > { %v584_v42 = vpop.eup %583  ;;  %593 = vrcp.f32 %v330_v39  ;;  %v336_v43 = vadd.f32 1.0, %v582_v40 }
  0xa3   : > { %v586_v44 = vpop.eup %585  ;;  %595 = vrcp.f32 %v331_v41  ;;  %v337_v45 = vadd.f32 1.0, %v584_v42 }
  0xa4   : > { %v588_v46 = vpop.eup %587  ;;  %597 = vrcp.f32 %v336_v43  ;;  %v332_v47 = vadd.f32 1.0, %v586_v44 }
  0xa5   : > { %599 = vrcp.f32 %v337_v45  ;;  %v333_v48 = vadd.f32 1.0, %v588_v46 }
  0xa6   : > { %601 = vrcp.f32 %v332_v47 }
  0xa7   : > { %603 = vrcp.f32 %v333_v48 }
  0xad   : > { %v590_v49 = vpop.eup %589 }
  0xae   : > { %v592_v51 = vpop.eup %591  ;;  %v374_v53 = vsub.f32 1.0, %v590_v49  ;;  %v366_v58 = vmul.f32 %v590_v49, %v358_v50 }
  0xaf   : > { %v594_v54 = vpop.eup %593  ;;  %v375_v55 = vsub.f32 1.0, %v592_v51  ;;  %v367_v63 = vmul.f32 %v592_v51, %v359_v52 }
  0xb0   : > { %v596_v57 = vpop.eup %595  ;;  %v382_v59 = vmul.f32 %v374_v53, %v358_v50  ;;  %v370_v61 = vsub.f32 1.0, %v594_v54  ;;  %v362_v5 = vmul.f32 %v594_v54, %v354_v56 }
  0xb1   : > { %v598_v62 = vpop.eup %597  ;;  %v383_v0 = vmul.f32 %v375_v55, %v359_v52  ;;  %v371_v1 = vsub.f32 1.0, %v596_v57  ;;  %v363_v11 = vmul.f32 %v596_v57, %v355_v60 }
  0xb2   : > { %v600_v3 = vpop.eup %599  ;;  %v390_v4 = vadd.f32 %v382_v59, %v366_v58  ;;  %v378_v6 = vmul.f32 %v370_v61, %v354_v56  ;;  %v376_v8 = vsub.f32 1.0, %v598_v62  ;;  %v368_v17 = vmul.f32 %v598_v62, %v360_v2 }
  0xb3   : > { %v602_v9 = vpop.eup %601  ;;  %v391_v10 = vadd.f32 %v383_v0, %v367_v63  ;;  %v379_v12 = vmul.f32 %v371_v1, %v355_v60  ;;  %v377_v13 = vsub.f32 1.0, %v600_v3  ;;  %v369_v22 = vmul.f32 %v600_v3, %v361_v7 }
  0xb4   : > { %v604_v15 = vpop.eup %603  ;;  %398 = vst [vmem:[%s691_s29 + $0x20] sm:$0xff] %v390_v4  ;;  %v386_v16 = vadd.f32 %v378_v6, %v362_v5  ;;  %v384_v18 = vmul.f32 %v376_v8, %v360_v2  ;;  %v372_v20 = vsub.f32 1.0, %v602_v9  ;;  %v364_v26 = vmul.f32 %v602_v9, %v356_v14 }
  0xb5   : > { %399 = vst [vmem:[%s691_s29 + $0x28] sm:$0xff] %v391_v10  ;;  %v387_v21 = vadd.f32 %v379_v12, %v363_v11  ;;  %v385_v23 = vmul.f32 %v377_v13, %v361_v7  ;;  %v373_v24 = vsub.f32 1.0, %v604_v15  ;;  %v365_v29 = vmul.f32 %v604_v15, %v357_v19 }
  0xb6   : > { %394 = vst [vmem:[%s691_s29] sm:$0xff] %v386_v16  ;;  %v392_v25 = vadd.f32 %v384_v18, %v368_v17  ;;  %v380_v27 = vmul.f32 %v372_v20, %v356_v14 }
  0xb7   : > { %395 = vst [vmem:[%s691_s29 + $0x8] sm:$0xff] %v387_v21  ;;  %v393_v28 = vadd.f32 %v385_v23, %v369_v22  ;;  %v381_v30 = vmul.f32 %v373_v24, %v357_v19 }
  0xb8   : > { %400 = vst [vmem:[%s691_s29 + $0x30] sm:$0xff] %v392_v25  ;;  %v388_v31 = vadd.f32 %v380_v27, %v364_v26 }
  0xb9   : > { %401 = vst [vmem:[%s691_s29 + $0x38] sm:$0xff] %v393_v28  ;;  %v389_v32 = vadd.f32 %v381_v30, %v365_v29 }
  0xba   : > { %396 = vst [vmem:[%s691_s29 + $0x10] sm:$0xff] %v388_v31 }
  0xbb   : > { %397 = vst [vmem:[%s691_s29 + $0x18] sm:$0xff] %v389_v32 }
  0xbc PF: > { %s13_s14 = sadd.s32 1, %s627_s14   ;;  %s718_s12 = smov %s623_s13 }
  0xbd   : > { %p10_p5 = scmp.ge.s32.totalorder %s13_s14, 4   ;;  %s719_s13 = smov %s721_s15 }
  0xbf   :  { %12 = sbr.rel (!%p10_p5) target bundleno = 2 (0x2), region = 68 }

// kernel: glf_forward.9
= control target key start
LH: loop header
LB: loop body
LE: loop exit
PB: predicated region body
PF: predicated region fallthrough
CT: control target
= control target key end

     0   :  { %s816_s18 = smov 0   ;;  %s818_s19 = smov 0   ;;  %s920_s0 = inlined_call_operand.vmem [shape: f32[2,64,256], index: 0, kind: input, shape index: {}]   ;;  %s921_s1 = inlined_call_operand.vmem [shape: f32[8,64], index: 1, kind: input, shape index: {}]   ;;  %s922_s2 = inlined_call_operand.vmem [shape: f32[8,1], index: 2, kind: input, shape index: {}]   ;;  %s923_s3 = inlined_call_operand.vmem [shape: f32[32,8], index: 3, kind: input, shape index: {}]   ;;  %s924_s4 = inlined_call_operand.vmem [shape: f32[32,1], index: 4, kind: input, shape index: {}]   ;;  %s925_s5 = inlined_call_operand.vmem [shape: f32[2,32,1], index: 5, kind: output, shape index: {}]  }
   0x1   :  { %s820_s20 = smov 0  }
   0x2 LB: > { %s27_s21 = sadd.s32 1, %s777_s19  ;;  %p675_p0 = scmp.ge.s32.totalorder %s781_s20, 1  ;;  %s781_s20 = sphi %s820_s20, %s15_s20   ;;  %s777_s19 = sphi %s818_s19, %s927_s19   ;;  %s773_s18 = sphi %s816_s18, %s926_s18  }
   0x3   : > { %p29_p1 = scmp.ge.s32.totalorder %s27_s21, 2  ;;  %p206_p2 = scmp.lt.s32.totalorder %s781_s20, 3 }
   0x5   : > { %s929_s21 = smov (%p29_p1, %s27_s21), 0  ;;  %p207_p3 = pnand %p675_p0, %p206_p2 }
   0x6   : > { %p239_p4 = scmp.lt.s32.totalorder (!%p207_p3), %s773_s18, 1 }
   0x7   : > { %210 = sbr.rel (%p207_p3) target bundleno = 722 (0x2d2), region = 40 }
   0xc   : > { %vm257_vm0 = vcmask 7168   ;;  %v783_v0 = vmov 0.0   ;;  %s931_s18 = smov (!%p239_p4, %s773_s18), 1  ;;  %v784_v25 = vmov 0   ;;  %v476_v53 = vld [vmem:[%s924_s4] sm:$0xff]  ;;  %v478_v58 = vld [vmem:[%s924_s4 + $0x10] sm:$0xff] }
   0xd   : > { %265 = vst.msk [vmem:[#allocation2 + $0x38] sm:$0xff] %vm257_vm0, %v783_v0  ;;  %258 = vst.msk [vmem:[#allocation2] sm:$0xff] %vm257_vm0, %v783_v0  ;;  %703 = vmatprep.subr.mxu0 %v783_v0  ;;  %s687_s22 = sshll.u32 %s931_s18, 7  ;;  %757 = vset.pattern.permute.xlu0 %v784_v25  ;;  %vm785_vm1 = vmmov 0   ;;  %vm397_vm2 = vcmask 523264   ;;  %vm500_vm3 = vcmask 64512  }
   0xe   : > { %259 = vst.msk [vmem:[#allocation2 + $0x8] sm:$0xff] %vm257_vm0, %v783_v0  ;;  %260 = vst.msk [vmem:[#allocation2 + $0x10] sm:$0xff] %vm257_vm0, %v783_v0  ;;  %s246_s25 = scalar_lea.vmem %s920_s0, %s687_s22  ;;  %758 = vset.pattern.permute.xlu1 %v784_v25  ;;  %719 = vmatprep.mubr.msk.f32.mxu0 %vm785_vm1, %v783_v0 }
   0xf   : > { %261 = vst.msk [vmem:[#allocation2 + $0x18] sm:$0xff] %vm257_vm0, %v783_v0  ;;  %262 = vst.msk [vmem:[#allocation2 + $0x20] sm:$0xff] %vm257_vm0, %v783_v0  ;;  %v280_v1 = vld [vmem:[%s246_s25 + $0x70] sm:$0xff]  ;;  %v281_v2 = vld [vmem:[%s246_s25 + $0x78] sm:$0xff] }
  0x10   : > { %263 = vst.msk [vmem:[#allocation2 + $0x28] sm:$0xff] %vm257_vm0, %v783_v0  ;;  %264 = vst.msk [vmem:[#allocation2 + $0x30] sm:$0xff] %vm257_vm0, %v783_v0  ;;  %v278_v3 = vld [vmem:[%s246_s25 + $0x60] sm:$0xff]  ;;  %v311_v4 = vadd.f32 %v281_v2, %v280_v1  ;;  %v279_v5 = vld [vmem:[%s246_s25 + $0x68] sm:$0xff] }
  0x11   : > { %v276_v6 = vld [vmem:[%s246_s25 + $0x50] sm:$0xff]  ;;  %v277_v7 = vld [vmem:[%s246_s25 + $0x58] sm:$0xff]  ;;  %v274_v9 = vld [vmem:[%s246_s25 + $0x40] sm:$0xff]  ;;  %v308_v11 = vadd.f32 %v279_v5, %v278_v3 }
  0x12   : > { %v305_v8 = vadd.f32 %v277_v7, %v276_v6  ;;  %v275_v10 = vld [vmem:[%s246_s25 + $0x48] sm:$0xff]  ;;  %312 = vadd.xlane.f32.xlu0 %v311_v4  ;;  %v272_v13 = vld [vmem:[%s246_s25 + $0x30] sm:$0xff]  ;;  %v273_v14 = vld [vmem:[%s246_s25 + $0x38] sm:$0xff] }
  0x13   : > { %v302_v12 = vadd.f32 %v275_v10, %v274_v9  ;;  %v270_v15 = vld [vmem:[%s246_s25 + $0x20] sm:$0xff]  ;;  %v271_v16 = vld [vmem:[%s246_s25 + $0x28] sm:$0xff]  ;;  %v299_v17 = vadd.f32 %v273_v14, %v272_v13  ;;  %v268_v19 = vld [vmem:[%s246_s25 + $0x10] sm:$0xff] }
  0x14   : > { %306 = vadd.xlane.f32.xlu1 %v305_v8  ;;  %v296_v18 = vadd.f32 %v271_v16, %v270_v15  ;;  %v269_v20 = vld [vmem:[%s246_s25 + $0x18] sm:$0xff]  ;;  %v266_v21 = vld [vmem:[%s246_s25] sm:$0xff]  ;;  %v267_v22 = vld [vmem:[%s246_s25 + $0x8] sm:$0xff]  ;;  %s688_s25 = sshll.u32 %s931_s18, 5 }
  0x15   : > { %v293_v23 = vadd.f32 %v269_v20, %v268_v19  ;;  %v290_v24 = vadd.f32 %v267_v22, %v266_v21  ;;  %v289_v26 = vld [vmem:[#allocation2 + $0x38] sm:$0xff]  ;;  %v284_v39 = vld [vmem:[#allocation2 + $0x10] sm:$0xff]  ;;  %v283_v45 = vld [vmem:[#allocation2 + $0x8] sm:$0xff]  ;;  %s252_s28 = scalar_lea.vmem %s925_s5, %s688_s25 }
  0x16   : > { %309 = vadd.xlane.f32.xlu0 %v308_v11  ;;  %v286_v33 = vld [vmem:[#allocation2 + $0x20] sm:$0xff]  ;;  %v285_v38 = vld [vmem:[#allocation2 + $0x18] sm:$0xff]  ;;  %v477_v6 = vld [vmem:[%s924_s4 + $0x8] sm:$0xff] }
  0x17   : > { %v287_v27 = vld [vmem:[#allocation2 + $0x28] sm:$0xff]  ;;  %v288_v31 = vld [vmem:[#allocation2 + $0x30] sm:$0xff]  ;;  %v282_v47 = vld [vmem:[#allocation2] sm:$0xff] }
  0x18   : > { %303 = vadd.xlane.f32.xlu1 %v302_v12  ;;  %v391_v5 = vld [vmem:[%s922_s2] sm:$0xff]  ;;  %v479_v7 = vld [vmem:[%s924_s4 + $0x18] sm:$0xff]  ;;  %v473_v22 = vld [vmem:[%s923_s3 + $0x8] sm:$0xff] }
  0x19   : > { %v390_v15 = vld [vmem:[%s921_s1] sm:$0xff] }
  0x1a   : > { %300 = vadd.xlane.f32.xlu0 %v299_v17  ;;  %v472_v17 = vld [vmem:[%s923_s3] sm:$0xff] }
  0x1b   : > { %724 = vmatprep.mubr.msk.f32.mxu1 %vm500_vm3, %v472_v17 }
  0x1c   : > { %297 = vadd.xlane.f32.xlu1 %v296_v18 }
  0x1e   : > { %294 = vadd.xlane.f32.xlu0 %v293_v23  ;;  %v474_v23 = vld [vmem:[%s923_s3 + $0x10] sm:$0xff] }
  0x20   : > { %291 = vadd.xlane.f32.xlu1 %v290_v24  ;;  %v475_v24 = vld [vmem:[%s923_s3 + $0x18] sm:$0xff] }
  0x9b   : > { %v313_v28 = vpop.xlane.xlu0 %312 }
  0x9c   : > { %v321_v29 = vadd.f32 %v313_v28, %v289_v26 }
  0x9d   : > { %v307_v30 = vpop.xlane.xlu1 %306 }
  0x9e   : > { %v319_v32 = vadd.f32 %v307_v30, %v287_v27  ;;  %330 = vst.msk [vmem:[#allocation2 + $0x38] sm:$0xff] %vm257_vm0, %v321_v29 }
  0x9f   : > { %v310_v34 = vpop.xlane.xlu0 %309 }
  0xa0   : > { %328 = vst.msk [vmem:[#allocation2 + $0x28] sm:$0xff] %vm257_vm0, %v319_v32  ;;  %v320_v35 = vadd.f32 %v310_v34, %v288_v31 }
  0xa1   : > { %v304_v36 = vpop.xlane.xlu1 %303 }
  0xa2   : > { %v318_v37 = vadd.f32 %v304_v36, %v286_v33  ;;  %329 = vst.msk [vmem:[#allocation2 + $0x30] sm:$0xff] %vm257_vm0, %v320_v35 }
  0xa3   : > { %v301_v40 = vpop.xlane.xlu0 %300 }
  0xa4   : > { %327 = vst.msk [vmem:[#allocation2 + $0x20] sm:$0xff] %vm257_vm0, %v318_v37  ;;  %v317_v41 = vadd.f32 %v301_v40, %v285_v38 }
  0xa5   : > { %v298_v42 = vpop.xlane.xlu1 %297  ;;  %v341_v43 = vld [vmem:[#allocation2 + $0x38] sm:$0xff] }
  0xa6   : > { %v316_v44 = vadd.f32 %v298_v42, %v284_v39  ;;  %v349_v46 = vmul.f32 0.00390625, %v341_v43  ;;  %326 = vst.msk [vmem:[#allocation2 + $0x18] sm:$0xff] %vm257_vm0, %v317_v41 }
  0xa7   : > { %v295_v48 = vpop.xlane.xlu0 %294  ;;  %v339_v52 = vld [vmem:[#allocation2 + $0x28] sm:$0xff] }
  0xa8   : > { %325 = vst.msk [vmem:[#allocation2 + $0x10] sm:$0xff] %vm257_vm0, %v316_v44  ;;  %387 = vperm.xlu0 %757, %v349_v46   ;;  %v315_v49 = vadd.f32 %v295_v48, %v283_v45  ;;  %v347_v56 = vmul.f32 0.00390625, %v339_v52 }
  0xa9   : > { %v292_v50 = vpop.xlane.xlu1 %291  ;;  %v340_v51 = vld [vmem:[#allocation2 + $0x30] sm:$0xff] }
  0xaa   : > { %v314_v54 = vadd.f32 %v292_v50, %v282_v47  ;;  %v348_v55 = vmul.f32 0.00390625, %v340_v51  ;;  %324 = vst.msk [vmem:[#allocation2 + $0x8] sm:$0xff] %vm257_vm0, %v315_v49 }
  0xab   : > { %v338_v57 = vld [vmem:[#allocation2 + $0x20] sm:$0xff] }
  0xac   : > { %323 = vst.msk [vmem:[#allocation2] sm:$0xff] %vm257_vm0, %v314_v54  ;;  %382 = vperm.xlu1 %758, %v348_v55   ;;  %482 = vperm.xlu0 %757, %v476_v53   ;;  %v346_v59 = vmul.f32 0.00390625, %v338_v57 }
  0xad   : > { %v337_v60 = vld [vmem:[#allocation2 + $0x18] sm:$0xff] }
  0xae   : > { %v345_v61 = vmul.f32 0.00390625, %v337_v60 }
  0xaf   : > { %v336_v62 = vld [vmem:[#allocation2 + $0x10] sm:$0xff] }
  0xb0   : > { %377 = vperm.xlu1 %758, %v347_v56   ;;  %492 = vperm.xlu0 %757, %v478_v58   ;;  %v344_v63 = vmul.f32 0.00390625, %v336_v62 }
  0xb1   : > { %v335_v1 = vld [vmem:[#allocation2 + $0x8] sm:$0xff] }
  0xb2   : > { %v343_v2 = vmul.f32 0.00390625, %v335_v1 }
  0xb3   : > { %v334_v3 = vld [vmem:[#allocation2] sm:$0xff] }
  0xb4   : > { %372 = vperm.xlu1 %758, %v346_v59   ;;  %v342_v4 = vmul.f32 0.00390625, %v334_v3 }
  0xb8   : > { %367 = vperm.xlu1 %758, %v345_v61  }
  0xbc   : > { %362 = vperm.xlu1 %758, %v344_v63  }
  0xc0   : > { %357 = vperm.xlu1 %758, %v343_v2  }
  0xc4   : > { %352 = vperm.xlu1 %758, %v342_v4  }
  0xc8   : > { %394 = vperm.xlu1 %758, %v391_v5  }
  0xcc   : > { %487 = vperm.xlu1 %758, %v477_v6  }
  0xd0   : > { %497 = vperm.xlu1 %758, %v479_v7  }
 0x123   : > { %v388_v8 = vpop.permute.xlu0 %387 }
 0x124   : > { %704 = vmatpush3.msra.mxu0 %v388_v8 }
 0x125   : > { %705 = vmatprep.subr.mxu0 %v783_v0 }
 0x127   : > { %v383_v9 = vpop.permute.xlu1 %382  ;;  %v483_v26 = vpop.permute.xlu0 %482 }
 0x128   : > { %706 = vmatpush3.msra.mxu0 %v383_v9 }
 0x129   : > { %707 = vmatprep.subr.mxu0 %v783_v0 }
 0x12b   : > { %v378_v10 = vpop.permute.xlu1 %377  ;;  %v493_v34 = vpop.permute.xlu0 %492 }
 0x12c   : > { %708 = vmatpush3.msra.mxu0 %v378_v10 }
 0x12d   : > { %709 = vmatprep.subr.mxu0 %v783_v0 }
 0x12f   : > { %v373_v11 = vpop.permute.xlu1 %372 }
 0x130   : > { %710 = vmatpush3.msra.mxu0 %v373_v11 }
 0x131   : > { %711 = vmatprep.subr.mxu0 %v783_v0 }
 0x133   : > { %v368_v12 = vpop.permute.xlu1 %367 }
 0x134   : > { %712 = vmatpush3.msra.mxu0 %v368_v12 }
 0x135   : > { %713 = vmatprep.subr.mxu0 %v783_v0 }
 0x137   : > { %v363_v13 = vpop.permute.xlu1 %362 }
 0x138   : > { %714 = vmatpush3.msra.mxu0 %v363_v13 }
 0x139   : > { %715 = vmatprep.subr.mxu0 %v783_v0 }
 0x13b   : > { %v358_v14 = vpop.permute.xlu1 %357 }
 0x13c   : > { %716 = vmatpush3.msra.mxu0 %v358_v14 }
 0x13d   : > { %717 = vmatprep.subr.mxu0 %v783_v0 }
 0x13f   : > { %v353_v16 = vpop.permute.xlu1 %352 }
 0x140   : > { %718 = vmatpush3.msra.mxu0 %v353_v16 }
 0x141   : > { %720 = vmatmul.mubr.msk.f32.vlgmr.msra.gmra.mxu0 %vm397_vm2, %v390_v15 }
 0x143   : > { %v395_v18 = vpop.permute.xlu1 %394 }
 0x147   : > { %v488_v25 = vpop.permute.xlu1 %487 }
 0x14b   : > { %v498_v31 = vpop.permute.xlu1 %497 }
 0x201   : > { %v467_v19 = vpop.f32.mrf.mxu0 }
 0x202   : > { %v468_v20 = vadd.f32 %v467_v19, %v395_v18 }
 0x203   : > { %v721_v21 = vpop.f32.mrf.mxu0 }
 0x204   : > { %v471_v0 = vmax.f32 %v468_v20, 0.0 }
 0x206   : > { %722 = vmatprep.subr.mxu1 %v471_v0 }
 0x207   : > { %723 = vmatpush3.msra.mxu1 %v471_v0 }
 0x208   : > { %725 = vmatmul.mubr.msk.f32.vlgmr.msra.gmra.mxu1 %vm500_vm3, %v473_v22 }
 0x209   : > { %727 = vmatprep.mubr.msk.f32.mxu1 %vm500_vm3, %v474_v23 }
 0x20c   : > { %728 = vmatmul.mubr.msk.f32.gmra.mxu1 %vm500_vm3, %v475_v24 }
 0x2c8   : > { %v726_v27 = vpop.f32.mrf.mxu1 }
 0x2c9   : > { %v585_v28 = vadd.f32 %v726_v27, %v488_v25 }
 0x2ca   : > { %v579_v29 = vpop.f32.mrf.mxu1 }
 0x2cb   : > { %599 = vst.msk [vmem:[%s252_s28 + $0x8] sm:$0xff] %vm257_vm0, %v585_v28  ;;  %v580_v30 = vadd.f32 %v579_v29, %v483_v26 }
 0x2cc   : > { %v729_v32 = vpop.f32.mrf.mxu1 }
 0x2cd   : > { %598 = vst.msk [vmem:[%s252_s28] sm:$0xff] %vm257_vm0, %v580_v30  ;;  %v595_v33 = vadd.f32 %v729_v32, %v498_v31 }
 0x2ce   : > { %v589_v35 = vpop.f32.mrf.mxu1 }
 0x2cf   : > { %601 = vst.msk [vmem:[%s252_s28 + $0x18] sm:$0xff] %vm257_vm0, %v595_v33  ;;  %v590_v36 = vadd.f32 %v589_v35, %v493_v34 }
 0x2d1   : > { %600 = vst.msk [vmem:[%s252_s28 + $0x10] sm:$0xff] %vm257_vm0, %v590_v36 }
 0x2d2 PF: > { %s15_s20 = sadd.s32 1, %s781_s20   ;;  %s926_s18 = smov %s777_s19 }
 0x2d3   : > { %p12_p5 = scmp.ge.s32.totalorder %s15_s20, 4   ;;  %s927_s19 = smov %s929_s21 }
 0x2d5   :  { %14 = sbr.rel (!%p12_p5) target bundleno = 2 (0x2), region = 78 }

</bundles_post_ra>
